<compile_context>
chip_gen: v5e
topology: v5e:2x2
jax: 0.10.0
libtpu: 0.0.40
codegen_flags: <defaults>
</compile_context>

<pallas_src>
import jax
import jax.numpy as jnp
from jax.experimental import pallas as pl
from jax.experimental.pallas import tpu as pltpu

_EPS_SQ = 1e-24   # clamp on ||y||^2  (== F.normalize's 1e-12 clamp on ||y||)
_NUM_STREAMS = 5  # img_i, img_t, img_ti, txt_i, txt_t


def _round_up(x, m):
    return ((x + m - 1) // m) * m


# ---------------------------------------------------------------------------
# Kernel
# ---------------------------------------------------------------------------
def _linsub_kernel(wt_ref, x1_ref, x2_ref, x3_ref, x4_ref, x5_ref,
                   o1_ref, o2_ref, o3_ref, o4_ref, o5_ref):
    # wt_ref : [Din, Dpad]  resident weight tile (same block index every step)
    # x*_ref : [TM, Din]    row tile of one of the 5 input streams
    # o*_ref : [TM, Dpad]   matching lane-dense (multiple-of-128) output tile
    wt = wt_ref[...]
    for x_ref, o_ref in ((x1_ref, o1_ref), (x2_ref, o2_ref), (x3_ref, o3_ref),
                         (x4_ref, o4_ref), (x5_ref, o5_ref)):
        y = jnp.dot(x_ref[...], wt, preferred_element_type=jnp.float32)   # MXU
        sq = jnp.sum(y * y, axis=-1, keepdims=True)                       # VPU/XLU
        inv_norm = jax.lax.rsqrt(jnp.maximum(sq, _EPS_SQ))                # EUP
        o_ref[...] = (y * inv_norm).astype(o_ref.dtype)


# ---------------------------------------------------------------------------
# One-time weight preparation (cache the result across forward calls)
# ---------------------------------------------------------------------------
def prepare_weight(W, lane_multiple=128, dtype=None):
    """Transpose W to [Din, Dout] and zero-pad Dout to a multiple of 128 lanes.
    Zero columns contribute 0 to the row norm, so the normalized result in the
    first out_dim columns is unchanged.  Optionally cast to bf16 (dtype=
    jnp.bfloat16) to halve HBM traffic; the matmul still accumulates in f32."""
    out_dim, din = W.shape
    dpad = _round_up(out_dim, lane_multiple)
    wt = jnp.transpose(W)                     # [Din, Dout]
    if dpad > out_dim:
        wt = jnp.pad(wt, ((0, 0), (0, dpad - out_dim)))
    if dtype is not None:
        wt = wt.astype(dtype)
    return wt                                 # [Din, Dpad]


# ---------------------------------------------------------------------------
# VMEM sizing (generation-aware, full footprint accounting)
# ---------------------------------------------------------------------------
def _vmem_capacity_bytes():
    try:
        return int(pltpu.get_tpu_info().vmem_capacity_bytes)
    except Exception:
        return 64 * 1024 * 1024   # conservative default (v7x per-TC VMEM)


def _per_row_bytes(din, dpad, in_itemsize, out_itemsize):
    # Double-buffered input/output tiles for all 5 streams + f32 intermediates
    # (y, y*y, normalized result — conservative margin).
    io = 2 * _NUM_STREAMS * (din * in_itemsize + dpad * out_itemsize)
    temps = (din + 4 * dpad) * 4
    return io + temps


def _footprint_bytes(tm, din, dpad, in_itemsize, out_itemsize, w_itemsize):
    weight = 2 * din * dpad * w_itemsize   # conservative: count 2 buffers
    return weight + tm * _per_row_bytes(din, dpad, in_itemsize, out_itemsize)


def _choose_tm(batch, din, dpad, in_itemsize, out_itemsize, w_itemsize, budget):
    weight_bytes = 2 * din * dpad * w_itemsize
    per_row = _per_row_bytes(din, dpad, in_itemsize, out_itemsize)
    tm_cap = max(8, ((budget - weight_bytes) // per_row) // 8 * 8)
    tm_cap = min(tm_cap, 2048)
    # Guarantee >= 2 grid steps (prefer 4) so v7x's two TensorCores both get
    # work and input-prefetch / output-writeback overlap with compute.
    if batch >= 32:
        target_steps = 4
    elif batch >= 16:
        target_steps = 2
    else:
        target_steps = 1
    tm_split = _round_up(pl.cdiv(batch, target_steps), 8)
    return max(8, min(tm_cap, tm_split))


# ---------------------------------------------------------------------------
# Pallas forward
# ---------------------------------------------------------------------------
def _pallas_forward(wt_padded, inputs, batch, din, dpad):
    in_itemsize = jnp.dtype(inputs[0].dtype).itemsize
    out_itemsize = in_itemsize
    w_itemsize = jnp.dtype(wt_padded.dtype).itemsize

    cap = _vmem_capacity_bytes()
    budget = min(int(cap * 0.70), 64 * 1024 * 1024)       # tile footprint target
    limit_cap = min(int(cap * 0.85), 100 * 1024 * 1024)   # scoped-VMEM ceiling

    tm = _choose_tm(batch, din, dpad, in_itemsize, out_itemsize, w_itemsize,
                    budget)
    grid = (pl.cdiv(batch, tm),)

    needed = _footprint_bytes(tm, din, dpad, in_itemsize, out_itemsize,
                              w_itemsize)
    vmem_limit = int(min(max(needed + (8 << 20), 32 << 20), limit_cap))

    x_spec = pl.BlockSpec((tm, din), lambda i: (i, 0))
    o_spec = pl.BlockSpec((tm, dpad), lambda i: (i, 0))
    out_shapes = tuple(jax.ShapeDtypeStruct((batch, dpad), inputs[0].dtype)
                       for _ in range(_NUM_STREAMS))

    def call(single_buffer_weight):
        if single_buffer_weight:
            # Constant block index -> second pipeline buffer is dead VMEM.
            w_spec = pl.BlockSpec((din, dpad), lambda i: (0, 0),
                                  pipeline_mode=pl.Buffered(1))
        else:
            w_spec = pl.BlockSpec((din, dpad), lambda i: (0, 0))
        return pl.pallas_call(
            _linsub_kernel,
            out_shape=out_shapes,
            grid=grid,
            in_specs=[w_spec] + [x_spec] * _NUM_STREAMS,
            out_specs=[o_spec] * _NUM_STREAMS,
            compiler_params=pltpu.CompilerParams(
                dimension_semantics=("parallel",),
                vmem_limit_bytes=vmem_limit),
        )(wt_padded, *inputs)

    try:
        return call(single_buffer_weight=True)
    except Exception:
        # JAX versions without BlockSpec(pipeline_mode=...): default buffering.
        return call(single_buffer_weight=False)


def linear_subspace_forward(img_i, img_t, img_ti, txt_i, txt_t, class_id=None,
                            *, W=None, wt_padded=None, out_dim=None,
                            slice_outputs=True, min_pallas_batch=16):
    """Fused F.linear + per-row L2 normalization for all 5 input streams.

    Matches LinearSubspace.forward (class_id is unused).  Pass either
    W [out_dim, input_size] or a cached wt_padded = prepare_weight(W) plus
    out_dim (preferred: avoids re-transposing/padding the weight every call).

    slice_outputs=False returns the lane-dense padded [B, Dpad] arrays whose
    columns >= out_dim are exactly 0; folding the slice into the consumer
    avoids an extra HBM read+write of all 5 outputs.
    """
    del class_id  # unused in forward, as in the PyTorch module
    if wt_padded is None:
        if W is None:
            raise ValueError("pass either W or (wt_padded, out_dim)")
        out_dim = W.shape[0]
        wt_padded = prepare_weight(W)
    if out_dim is None:
        raise ValueError("out_dim is required when passing wt_padded")

    inputs = (img_i, img_t, img_ti, txt_i, txt_t)
    batch, din = img_i.shape
    for x in inputs:
        assert x.shape == (batch, din), "all 5 inputs must share [B, input_size]"
    din_w, dpad = wt_padded.shape
    assert din_w == din and dpad % 128 == 0

    if batch < min_pallas_batch:
        # Tiny batches: fixed pallas_call + per-step cost dominates; XLA wins.
        outs = []
        for x in inputs:
            y = jnp.dot(x, wt_padded, preferred_element_type=jnp.float32)
            inv = jax.lax.rsqrt(jnp.maximum(
                jnp.sum(y * y, axis=-1, keepdims=True), _EPS_SQ))
            outs.append((y * inv).astype(x.dtype))
        outs = tuple(outs)
    else:
        outs = _pallas_forward(wt_padded, inputs, batch, din, dpad)

    if slice_outputs and dpad > out_dim:
        outs = tuple(o[:, :out_dim] for o in outs)
    return outs


def make_orthogonal_weight(key, out_dim, input_size):
    """Deterministic stand-in for torch.nn.init.orthogonal_ on W[out_dim, input_size]."""
    a = jax.random.normal(key, (input_size, out_dim), dtype=jnp.float32)
    q, _ = jnp.linalg.qr(a)   # [input_size, out_dim], orthonormal columns
    return q.T                # rows of W orthonormal (out_dim <= input_size)


if __name__ == "__main__":
    key = jax.random.PRNGKey(0)
    k_w, k1, k2, k3, k4, k5 = jax.random.split(key, 6)

    batch = 64        # exercises the multi-step "parallel" grid (4 steps)
    input_size = 128  # small-shape analogue of the default 512
    out_dim = 64

    W = make_orthogonal_weight(k_w, out_dim, input_size)
    wt_padded = prepare_weight(W)     # hoisted / cacheable weight prep

    xs = [jax.random.normal(k, (batch, input_size), dtype=jnp.float32)
          for k in (k1, k2, k3, k4, k5)]

    # Optimized path: padded lane-dense outputs, slice folded into the consumer.
    outs_pad = linear_subspace_forward(
        *xs, class_id=None, wt_padded=wt_padded, out_dim=out_dim,
        slice_outputs=False)
    outs_pad = jax.block_until_ready(outs_pad)

    def ref(x):
        y = x @ W.T
        return y / jnp.linalg.norm(y, axis=-1, keepdims=True)

    for o, x in zip(outs_pad, xs):
        assert o.shape == (batch, 128)
        assert jnp.allclose(o[:, :out_dim], ref(x), atol=1e-5, rtol=1e-5)
        assert jnp.all(o[:, out_dim:] == 0.0)     # padded columns are exact 0

    # Exact-module-semantics path (also exercises the small-batch fallback).
    xs_small = [x[:2] for x in xs]
    outs_small = linear_subspace_forward(*xs_small, class_id=None, W=W)
    outs_small = jax.block_until_ready(outs_small)
    for o, x in zip(outs_small, xs_small):
        assert o.shape == (2, out_dim)
        assert jnp.allclose(o, ref(x), atol=1e-5, rtol=1e-5)

    # TODO(synk): _weight_norm (orthogonality penalty) is not part of forward;
    # keep it in plain JAX if needed.
    print("KERNEL_OK")
</pallas_src>

<mosaic_0001>
module attributes {stable_mosaic.version = 11 : i64} {
  func.func @_linsub_kernel(%arg0: i32, %arg1: memref<128x128xf32, #tpu.memory_space<vmem>>, %arg2: memref<16x128xf32, #tpu.memory_space<vmem>>, %arg3: memref<16x128xf32, #tpu.memory_space<vmem>>, %arg4: memref<16x128xf32, #tpu.memory_space<vmem>>, %arg5: memref<16x128xf32, #tpu.memory_space<vmem>>, %arg6: memref<16x128xf32, #tpu.memory_space<vmem>>, %arg7: memref<16x128xf32, #tpu.memory_space<vmem>>, %arg8: memref<16x128xf32, #tpu.memory_space<vmem>>, %arg9: memref<16x128xf32, #tpu.memory_space<vmem>>, %arg10: memref<16x128xf32, #tpu.memory_space<vmem>>, %arg11: memref<16x128xf32, #tpu.memory_space<vmem>>) attributes {dimension_semantics = [#tpu.dimension_semantics<parallel>], iteration_bounds = array<i64: 4>, scalar_prefetch = 0 : i64, scratch_operands = 0 : i64, tpu.core_type = #tpu.core_type<tc>, window_params = [{pipeline_mode = #tpu.pipeline_mode<synchronous>, transform_indices = @transform_0, window_bounds = array<i64: 128, 128>}, {transform_indices = @transform_1, window_bounds = array<i64: 16, 128>}, {transform_indices = @transform_2, window_bounds = array<i64: 16, 128>}, {transform_indices = @transform_3, window_bounds = array<i64: 16, 128>}, {transform_indices = @transform_4, window_bounds = array<i64: 16, 128>}, {transform_indices = @transform_5, window_bounds = array<i64: 16, 128>}, {transform_indices = @transform_6, window_bounds = array<i64: 16, 128>}, {transform_indices = @transform_7, window_bounds = array<i64: 16, 128>}, {transform_indices = @transform_8, window_bounds = array<i64: 16, 128>}, {transform_indices = @transform_9, window_bounds = array<i64: 16, 128>}, {transform_indices = @transform_10, window_bounds = array<i64: 16, 128>}]} {
    %c0 = arith.constant 0 : index
    %c0_0 = arith.constant 0 : index
    %0 = vector.load %arg1[%c0, %c0_0] : memref<128x128xf32, #tpu.memory_space<vmem>>, vector<128x128xf32>
    %c0_1 = arith.constant 0 : index
    %c0_2 = arith.constant 0 : index
    %1 = vector.load %arg2[%c0_1, %c0_2] : memref<16x128xf32, #tpu.memory_space<vmem>>, vector<16x128xf32>
    %cst = arith.constant dense<0.000000e+00> : vector<16x128xf32>
    %2 = tpu.matmul %1, %0, %cst {dimension_numbers = #tpu.dot_dimension_numbers<[1], [0], [0], [1], [0, 0, 1, 1], [], []>} : vector<16x128xf32>, vector<128x128xf32>, vector<16x128xf32> -> vector<16x128xf32>
    %3 = arith.mulf %2, %2 : vector<16x128xf32>
    %cst_3 = arith.constant dense<0.000000e+00> : vector<16xf32>
    %4 = vector.multi_reduction <add>, %3, %cst_3 [1] : vector<16x128xf32> to vector<16xf32>
    %5 = vector.shape_cast %4 : vector<16xf32> to vector<16x1xf32>
    %cst_4 = arith.constant 1.000000e-24 : f32
    %6 = vector.broadcast %cst_4 : f32 to vector<16x1xf32>
    %7 = arith.maximumf %5, %6 : vector<16x1xf32>
    %8 = math.rsqrt %7 : vector<16x1xf32>
    %9 = vector.broadcast %8 : vector<16x1xf32> to vector<16x128xf32>
    %10 = arith.mulf %2, %9 : vector<16x128xf32>
    %c0_5 = arith.constant 0 : index
    %c0_6 = arith.constant 0 : index
    %11 = vector.load %arg7[%c0_5, %c0_6] : memref<16x128xf32, #tpu.memory_space<vmem>>, vector<16x128xf32>
    tpu.vector_store %arg7[%c0_5, %c0_6], %10 {strides = array<i32>} : memref<16x128xf32, #tpu.memory_space<vmem>>, vector<16x128xf32>,
    %c0_7 = arith.constant 0 : index
    %c0_8 = arith.constant 0 : index
    %12 = vector.load %arg3[%c0_7, %c0_8] : memref<16x128xf32, #tpu.memory_space<vmem>>, vector<16x128xf32>
    %cst_9 = arith.constant dense<0.000000e+00> : vector<16x128xf32>
    %13 = tpu.matmul %12, %0, %cst_9 {dimension_numbers = #tpu.dot_dimension_numbers<[1], [0], [0], [1], [0, 0, 1, 1], [], []>} : vector<16x128xf32>, vector<128x128xf32>, vector<16x128xf32> -> vector<16x128xf32>
    %14 = arith.mulf %13, %13 : vector<16x128xf32>
    %cst_10 = arith.constant dense<0.000000e+00> : vector<16xf32>
    %15 = vector.multi_reduction <add>, %14, %cst_10 [1] : vector<16x128xf32> to vector<16xf32>
    %16 = vector.shape_cast %15 : vector<16xf32> to vector<16x1xf32>
    %cst_11 = arith.constant 1.000000e-24 : f32
    %17 = vector.broadcast %cst_11 : f32 to vector<16x1xf32>
    %18 = arith.maximumf %16, %17 : vector<16x1xf32>
    %19 = math.rsqrt %18 : vector<16x1xf32>
    %20 = vector.broadcast %19 : vector<16x1xf32> to vector<16x128xf32>
    %21 = arith.mulf %13, %20 : vector<16x128xf32>
    %c0_12 = arith.constant 0 : index
    %c0_13 = arith.constant 0 : index
    %22 = vector.load %arg8[%c0_12, %c0_13] : memref<16x128xf32, #tpu.memory_space<vmem>>, vector<16x128xf32>
    tpu.vector_store %arg8[%c0_12, %c0_13], %21 {strides = array<i32>} : memref<16x128xf32, #tpu.memory_space<vmem>>, vector<16x128xf32>,
    %c0_14 = arith.constant 0 : index
    %c0_15 = arith.constant 0 : index
    %23 = vector.load %arg4[%c0_14, %c0_15] : memref<16x128xf32, #tpu.memory_space<vmem>>, vector<16x128xf32>
    %cst_16 = arith.constant dense<0.000000e+00> : vector<16x128xf32>
    %24 = tpu.matmul %23, %0, %cst_16 {dimension_numbers = #tpu.dot_dimension_numbers<[1], [0], [0], [1], [0, 0, 1, 1], [], []>} : vector<16x128xf32>, vector<128x128xf32>, vector<16x128xf32> -> vector<16x128xf32>
    %25 = arith.mulf %24, %24 : vector<16x128xf32>
    %cst_17 = arith.constant dense<0.000000e+00> : vector<16xf32>
    %26 = vector.multi_reduction <add>, %25, %cst_17 [1] : vector<16x128xf32> to vector<16xf32>
    %27 = vector.shape_cast %26 : vector<16xf32> to vector<16x1xf32>
    %cst_18 = arith.constant 1.000000e-24 : f32
    %28 = vector.broadcast %cst_18 : f32 to vector<16x1xf32>
    %29 = arith.maximumf %27, %28 : vector<16x1xf32>
    %30 = math.rsqrt %29 : vector<16x1xf32>
    %31 = vector.broadcast %30 : vector<16x1xf32> to vector<16x128xf32>
    %32 = arith.mulf %24, %31 : vector<16x128xf32>
    %c0_19 = arith.constant 0 : index
    %c0_20 = arith.constant 0 : index
    %33 = vector.load %arg9[%c0_19, %c0_20] : memref<16x128xf32, #tpu.memory_space<vmem>>, vector<16x128xf32>
    tpu.vector_store %arg9[%c0_19, %c0_20], %32 {strides = array<i32>} : memref<16x128xf32, #tpu.memory_space<vmem>>, vector<16x128xf32>,
    %c0_21 = arith.constant 0 : index
    %c0_22 = arith.constant 0 : index
    %34 = vector.load %arg5[%c0_21, %c0_22] : memref<16x128xf32, #tpu.memory_space<vmem>>, vector<16x128xf32>
    %cst_23 = arith.constant dense<0.000000e+00> : vector<16x128xf32>
    %35 = tpu.matmul %34, %0, %cst_23 {dimension_numbers = #tpu.dot_dimension_numbers<[1], [0], [0], [1], [0, 0, 1, 1], [], []>} : vector<16x128xf32>, vector<128x128xf32>, vector<16x128xf32> -> vector<16x128xf32>
    %36 = arith.mulf %35, %35 : vector<16x128xf32>
    %cst_24 = arith.constant dense<0.000000e+00> : vector<16xf32>
    %37 = vector.multi_reduction <add>, %36, %cst_24 [1] : vector<16x128xf32> to vector<16xf32>
    %38 = vector.shape_cast %37 : vector<16xf32> to vector<16x1xf32>
    %cst_25 = arith.constant 1.000000e-24 : f32
    %39 = vector.broadcast %cst_25 : f32 to vector<16x1xf32>
    %40 = arith.maximumf %38, %39 : vector<16x1xf32>
    %41 = math.rsqrt %40 : vector<16x1xf32>
    %42 = vector.broadcast %41 : vector<16x1xf32> to vector<16x128xf32>
    %43 = arith.mulf %35, %42 : vector<16x128xf32>
    %c0_26 = arith.constant 0 : index
    %c0_27 = arith.constant 0 : index
    %44 = vector.load %arg10[%c0_26, %c0_27] : memref<16x128xf32, #tpu.memory_space<vmem>>, vector<16x128xf32>
    tpu.vector_store %arg10[%c0_26, %c0_27], %43 {strides = array<i32>} : memref<16x128xf32, #tpu.memory_space<vmem>>, vector<16x128xf32>,
    %c0_28 = arith.constant 0 : index
    %c0_29 = arith.constant 0 : index
    %45 = vector.load %arg6[%c0_28, %c0_29] : memref<16x128xf32, #tpu.memory_space<vmem>>, vector<16x128xf32>
    %cst_30 = arith.constant dense<0.000000e+00> : vector<16x128xf32>
    %46 = tpu.matmul %45, %0, %cst_30 {dimension_numbers = #tpu.dot_dimension_numbers<[1], [0], [0], [1], [0, 0, 1, 1], [], []>} : vector<16x128xf32>, vector<128x128xf32>, vector<16x128xf32> -> vector<16x128xf32>
    %47 = arith.mulf %46, %46 : vector<16x128xf32>
    %cst_31 = arith.constant dense<0.000000e+00> : vector<16xf32>
    %48 = vector.multi_reduction <add>, %47, %cst_31 [1] : vector<16x128xf32> to vector<16xf32>
    %49 = vector.shape_cast %48 : vector<16xf32> to vector<16x1xf32>
    %cst_32 = arith.constant 1.000000e-24 : f32
    %50 = vector.broadcast %cst_32 : f32 to vector<16x1xf32>
    %51 = arith.maximumf %49, %50 : vector<16x1xf32>
    %52 = math.rsqrt %51 : vector<16x1xf32>
    %53 = vector.broadcast %52 : vector<16x1xf32> to vector<16x128xf32>
    %54 = arith.mulf %46, %53 : vector<16x128xf32>
    %c0_33 = arith.constant 0 : index
    %c0_34 = arith.constant 0 : index
    %55 = vector.load %arg11[%c0_33, %c0_34] : memref<16x128xf32, #tpu.memory_space<vmem>>, vector<16x128xf32>
    tpu.vector_store %arg11[%c0_33, %c0_34], %54 {strides = array<i32>} : memref<16x128xf32, #tpu.memory_space<vmem>>, vector<16x128xf32>,
    return
  }
  func.func @transform_0(%arg0: i32) -> (i32, i32) {
    %c0_i32 = arith.constant 0 : i32
    %c0_i32_0 = arith.constant 0 : i32
    %c0_i32_1 = arith.constant 0 : i32
    return %c0_i32, %c0_i32_0 : i32, i32
  }
  func.func @transform_1(%arg0: i32) -> (i32, i32) {
    %c0_i32 = arith.constant 0 : i32
    %c0_i32_0 = arith.constant 0 : i32
    return %arg0, %c0_i32 : i32, i32
  }
  func.func @transform_2(%arg0: i32) -> (i32, i32) {
    %c0_i32 = arith.constant 0 : i32
    %c0_i32_0 = arith.constant 0 : i32
    return %arg0, %c0_i32 : i32, i32
  }
  func.func @transform_3(%arg0: i32) -> (i32, i32) {
    %c0_i32 = arith.constant 0 : i32
    %c0_i32_0 = arith.constant 0 : i32
    return %arg0, %c0_i32 : i32, i32
  }
  func.func @transform_4(%arg0: i32) -> (i32, i32) {
    %c0_i32 = arith.constant 0 : i32
    %c0_i32_0 = arith.constant 0 : i32
    return %arg0, %c0_i32 : i32, i32
  }
  func.func @transform_5(%arg0: i32) -> (i32, i32) {
    %c0_i32 = arith.constant 0 : i32
    %c0_i32_0 = arith.constant 0 : i32
    return %arg0, %c0_i32 : i32, i32
  }
  func.func @transform_6(%arg0: i32) -> (i32, i32) {
    %c0_i32 = arith.constant 0 : i32
    %c0_i32_0 = arith.constant 0 : i32
    return %arg0, %c0_i32 : i32, i32
  }
  func.func @transform_7(%arg0: i32) -> (i32, i32) {
    %c0_i32 = arith.constant 0 : i32
    %c0_i32_0 = arith.constant 0 : i32
    return %arg0, %c0_i32 : i32, i32
  }
  func.func @transform_8(%arg0: i32) -> (i32, i32) {
    %c0_i32 = arith.constant 0 : i32
    %c0_i32_0 = arith.constant 0 : i32
    return %arg0, %c0_i32 : i32, i32
  }
  func.func @transform_9(%arg0: i32) -> (i32, i32) {
    %c0_i32 = arith.constant 0 : i32
    %c0_i32_0 = arith.constant 0 : i32
    return %arg0, %c0_i32 : i32, i32
  }
  func.func @transform_10(%arg0: i32) -> (i32, i32) {
    %c0_i32 = arith.constant 0 : i32
    %c0_i32_0 = arith.constant 0 : i32
    return %arg0, %c0_i32 : i32, i32
  }
}

module attributes {stable_mosaic.version = 11 : i64} {
  func.func @_linsub_kernel(%arg0: i32, %arg1: memref<128x128xf32, #tpu.memory_space<vmem>>, %arg2: memref<16x128xf32, #tpu.memory_space<vmem>>, %arg3: memref<16x128xf32, #tpu.memory_space<vmem>>, %arg4: memref<16x128xf32, #tpu.memory_space<vmem>>, %arg5: memref<16x128xf32, #tpu.memory_space<vmem>>, %arg6: memref<16x128xf32, #tpu.memory_space<vmem>>, %arg7: memref<16x128xf32, #tpu.memory_space<vmem>>, %arg8: memref<16x128xf32, #tpu.memory_space<vmem>>, %arg9: memref<16x128xf32, #tpu.memory_space<vmem>>, %arg10: memref<16x128xf32, #tpu.memory_space<vmem>>, %arg11: memref<16x128xf32, #tpu.memory_space<vmem>>) attributes {dimension_semantics = [#tpu.dimension_semantics<parallel>], iteration_bounds = array<i64: 4>, scalar_prefetch = 0 : i64, scratch_operands = 0 : i64, tpu.core_type = #tpu.core_type<tc>, window_params = [{pipeline_mode = #tpu.pipeline_mode<synchronous>, transform_indices = @transform_0, window_bounds = array<i64: 128, 128>}, {transform_indices = @transform_1, window_bounds = array<i64: 16, 128>}, {transform_indices = @transform_2, window_bounds = array<i64: 16, 128>}, {transform_indices = @transform_3, window_bounds = array<i64: 16, 128>}, {transform_indices = @transform_4, window_bounds = array<i64: 16, 128>}, {transform_indices = @transform_5, window_bounds = array<i64: 16, 128>}, {transform_indices = @transform_6, window_bounds = array<i64: 16, 128>}, {transform_indices = @transform_7, window_bounds = array<i64: 16, 128>}, {transform_indices = @transform_8, window_bounds = array<i64: 16, 128>}, {transform_indices = @transform_9, window_bounds = array<i64: 16, 128>}, {transform_indices = @transform_10, window_bounds = array<i64: 16, 128>}]} {
    %c0 = arith.constant 0 : index
    %c0_0 = arith.constant 0 : index
    %0 = vector.load %arg1[%c0, %c0_0] : memref<128x128xf32, #tpu.memory_space<vmem>>, vector<128x128xf32>
    %c0_1 = arith.constant 0 : index
    %c0_2 = arith.constant 0 : index
    %1 = vector.load %arg2[%c0_1, %c0_2] : memref<16x128xf32, #tpu.memory_space<vmem>>, vector<16x128xf32>
    %cst = arith.constant dense<0.000000e+00> : vector<16x128xf32>
    %2 = tpu.matmul %1, %0, %cst {dimension_numbers = #tpu.dot_dimension_numbers<[1], [0], [0], [1], [0, 0, 1, 1], [], []>} : vector<16x128xf32>, vector<128x128xf32>, vector<16x128xf32> -> vector<16x128xf32>
    %3 = arith.mulf %2, %2 : vector<16x128xf32>
    %cst_3 = arith.constant dense<0.000000e+00> : vector<16xf32>
    %4 = vector.multi_reduction <add>, %3, %cst_3 [1] : vector<16x128xf32> to vector<16xf32>
    %5 = vector.shape_cast %4 : vector<16xf32> to vector<16x1xf32>
    %cst_4 = arith.constant 1.000000e-24 : f32
    %6 = vector.broadcast %cst_4 : f32 to vector<16x1xf32>
    %7 = arith.maximumf %5, %6 : vector<16x1xf32>
    %8 = math.rsqrt %7 : vector<16x1xf32>
    %9 = vector.broadcast %8 : vector<16x1xf32> to vector<16x128xf32>
    %10 = arith.mulf %2, %9 : vector<16x128xf32>
    %c0_5 = arith.constant 0 : index
    %c0_6 = arith.constant 0 : index
    %11 = vector.load %arg7[%c0_5, %c0_6] : memref<16x128xf32, #tpu.memory_space<vmem>>, vector<16x128xf32>
    tpu.vector_store %arg7[%c0_5, %c0_6], %10 {strides = array<i32>} : memref<16x128xf32, #tpu.memory_space<vmem>>, vector<16x128xf32>,
    %c0_7 = arith.constant 0 : index
    %c0_8 = arith.constant 0 : index
    %12 = vector.load %arg3[%c0_7, %c0_8] : memref<16x128xf32, #tpu.memory_space<vmem>>, vector<16x128xf32>
    %cst_9 = arith.constant dense<0.000000e+00> : vector<16x128xf32>
    %13 = tpu.matmul %12, %0, %cst_9 {dimension_numbers = #tpu.dot_dimension_numbers<[1], [0], [0], [1], [0, 0, 1, 1], [], []>} : vector<16x128xf32>, vector<128x128xf32>, vector<16x128xf32> -> vector<16x128xf32>
    %14 = arith.mulf %13, %13 : vector<16x128xf32>
    %cst_10 = arith.constant dense<0.000000e+00> : vector<16xf32>
    %15 = vector.multi_reduction <add>, %14, %cst_10 [1] : vector<16x128xf32> to vector<16xf32>
    %16 = vector.shape_cast %15 : vector<16xf32> to vector<16x1xf32>
    %cst_11 = arith.constant 1.000000e-24 : f32
    %17 = vector.broadcast %cst_11 : f32 to vector<16x1xf32>
    %18 = arith.maximumf %16, %17 : vector<16x1xf32>
    %19 = math.rsqrt %18 : vector<16x1xf32>
    %20 = vector.broadcast %19 : vector<16x1xf32> to vector<16x128xf32>
    %21 = arith.mulf %13, %20 : vector<16x128xf32>
    %c0_12 = arith.constant 0 : index
    %c0_13 = arith.constant 0 : index
    %22 = vector.load %arg8[%c0_12, %c0_13] : memref<16x128xf32, #tpu.memory_space<vmem>>, vector<16x128xf32>
    tpu.vector_store %arg8[%c0_12, %c0_13], %21 {strides = array<i32>} : memref<16x128xf32, #tpu.memory_space<vmem>>, vector<16x128xf32>,
    %c0_14 = arith.constant 0 : index
    %c0_15 = arith.constant 0 : index
    %23 = vector.load %arg4[%c0_14, %c0_15] : memref<16x128xf32, #tpu.memory_space<vmem>>, vector<16x128xf32>
    %cst_16 = arith.constant dense<0.000000e+00> : vector<16x128xf32>
    %24 = tpu.matmul %23, %0, %cst_16 {dimension_numbers = #tpu.dot_dimension_numbers<[1], [0], [0], [1], [0, 0, 1, 1], [], []>} : vector<16x128xf32>, vector<128x128xf32>, vector<16x128xf32> -> vector<16x128xf32>
    %25 = arith.mulf %24, %24 : vector<16x128xf32>
    %cst_17 = arith.constant dense<0.000000e+00> : vector<16xf32>
    %26 = vector.multi_reduction <add>, %25, %cst_17 [1] : vector<16x128xf32> to vector<16xf32>
    %27 = vector.shape_cast %26 : vector<16xf32> to vector<16x1xf32>
    %cst_18 = arith.constant 1.000000e-24 : f32
    %28 = vector.broadcast %cst_18 : f32 to vector<16x1xf32>
    %29 = arith.maximumf %27, %28 : vector<16x1xf32>
    %30 = math.rsqrt %29 : vector<16x1xf32>
    %31 = vector.broadcast %30 : vector<16x1xf32> to vector<16x128xf32>
    %32 = arith.mulf %24, %31 : vector<16x128xf32>
    %c0_19 = arith.constant 0 : index
    %c0_20 = arith.constant 0 : index
    %33 = vector.load %arg9[%c0_19, %c0_20] : memref<16x128xf32, #tpu.memory_space<vmem>>, vector<16x128xf32>
    tpu.vector_store %arg9[%c0_19, %c0_20], %32 {strides = array<i32>} : memref<16x128xf32, #tpu.memory_space<vmem>>, vector<16x128xf32>,
    %c0_21 = arith.constant 0 : index
    %c0_22 = arith.constant 0 : index
    %34 = vector.load %arg5[%c0_21, %c0_22] : memref<16x128xf32, #tpu.memory_space<vmem>>, vector<16x128xf32>
    %cst_23 = arith.constant dense<0.000000e+00> : vector<16x128xf32>
    %35 = tpu.matmul %34, %0, %cst_23 {dimension_numbers = #tpu.dot_dimension_numbers<[1], [0], [0], [1], [0, 0, 1, 1], [], []>} : vector<16x128xf32>, vector<128x128xf32>, vector<16x128xf32> -> vector<16x128xf32>
    %36 = arith.mulf %35, %35 : vector<16x128xf32>
    %cst_24 = arith.constant dense<0.000000e+00> : vector<16xf32>
    %37 = vector.multi_reduction <add>, %36, %cst_24 [1] : vector<16x128xf32> to vector<16xf32>
    %38 = vector.shape_cast %37 : vector<16xf32> to vector<16x1xf32>
    %cst_25 = arith.constant 1.000000e-24 : f32
    %39 = vector.broadcast %cst_25 : f32 to vector<16x1xf32>
    %40 = arith.maximumf %38, %39 : vector<16x1xf32>
    %41 = math.rsqrt %40 : vector<16x1xf32>
    %42 = vector.broadcast %41 : vector<16x1xf32> to vector<16x128xf32>
    %43 = arith.mulf %35, %42 : vector<16x128xf32>
    %c0_26 = arith.constant 0 : index
    %c0_27 = arith.constant 0 : index
    %44 = vector.load %arg10[%c0_26, %c0_27] : memref<16x128xf32, #tpu.memory_space<vmem>>, vector<16x128xf32>
    tpu.vector_store %arg10[%c0_26, %c0_27], %43 {strides = array<i32>} : memref<16x128xf32, #tpu.memory_space<vmem>>, vector<16x128xf32>,
    %c0_28 = arith.constant 0 : index
    %c0_29 = arith.constant 0 : index
    %45 = vector.load %arg6[%c0_28, %c0_29] : memref<16x128xf32, #tpu.memory_space<vmem>>, vector<16x128xf32>
    %cst_30 = arith.constant dense<0.000000e+00> : vector<16x128xf32>
    %46 = tpu.matmul %45, %0, %cst_30 {dimension_numbers = #tpu.dot_dimension_numbers<[1], [0], [0], [1], [0, 0, 1, 1], [], []>} : vector<16x128xf32>, vector<128x128xf32>, vector<16x128xf32> -> vector<16x128xf32>
    %47 = arith.mulf %46, %46 : vector<16x128xf32>
    %cst_31 = arith.constant dense<0.000000e+00> : vector<16xf32>
    %48 = vector.multi_reduction <add>, %47, %cst_31 [1] : vector<16x128xf32> to vector<16xf32>
    %49 = vector.shape_cast %48 : vector<16xf32> to vector<16x1xf32>
    %cst_32 = arith.constant 1.000000e-24 : f32
    %50 = vector.broadcast %cst_32 : f32 to vector<16x1xf32>
    %51 = arith.maximumf %49, %50 : vector<16x1xf32>
    %52 = math.rsqrt %51 : vector<16x1xf32>
    %53 = vector.broadcast %52 : vector<16x1xf32> to vector<16x128xf32>
    %54 = arith.mulf %46, %53 : vector<16x128xf32>
    %c0_33 = arith.constant 0 : index
    %c0_34 = arith.constant 0 : index
    %55 = vector.load %arg11[%c0_33, %c0_34] : memref<16x128xf32, #tpu.memory_space<vmem>>, vector<16x128xf32>
    tpu.vector_store %arg11[%c0_33, %c0_34], %54 {strides = array<i32>} : memref<16x128xf32, #tpu.memory_space<vmem>>, vector<16x128xf32>,
    return
  }
  func.func @transform_0(%arg0: i32) -> (i32, i32) {
    %c0_i32 = arith.constant 0 : i32
    %c0_i32_0 = arith.constant 0 : i32
    %c0_i32_1 = arith.constant 0 : i32
    return %c0_i32, %c0_i32_0 : i32, i32
  }
  func.func @transform_1(%arg0: i32) -> (i32, i32) {
    %c0_i32 = arith.constant 0 : i32
    %c0_i32_0 = arith.constant 0 : i32
    return %arg0, %c0_i32 : i32, i32
  }
  func.func @transform_2(%arg0: i32) -> (i32, i32) {
    %c0_i32 = arith.constant 0 : i32
    %c0_i32_0 = arith.constant 0 : i32
    return %arg0, %c0_i32 : i32, i32
  }
  func.func @transform_3(%arg0: i32) -> (i32, i32) {
    %c0_i32 = arith.constant 0 : i32
    %c0_i32_0 = arith.constant 0 : i32
    return %arg0, %c0_i32 : i32, i32
  }
  func.func @transform_4(%arg0: i32) -> (i32, i32) {
    %c0_i32 = arith.constant 0 : i32
    %c0_i32_0 = arith.constant 0 : i32
    return %arg0, %c0_i32 : i32, i32
  }
  func.func @transform_5(%arg0: i32) -> (i32, i32) {
    %c0_i32 = arith.constant 0 : i32
    %c0_i32_0 = arith.constant 0 : i32
    return %arg0, %c0_i32 : i32, i32
  }
  func.func @transform_6(%arg0: i32) -> (i32, i32) {
    %c0_i32 = arith.constant 0 : i32
    %c0_i32_0 = arith.constant 0 : i32
    return %arg0, %c0_i32 : i32, i32
  }
  func.func @transform_7(%arg0: i32) -> (i32, i32) {
    %c0_i32 = arith.constant 0 : i32
    %c0_i32_0 = arith.constant 0 : i32
    return %arg0, %c0_i32 : i32, i32
  }
  func.func @transform_8(%arg0: i32) -> (i32, i32) {
    %c0_i32 = arith.constant 0 : i32
    %c0_i32_0 = arith.constant 0 : i32
    return %arg0, %c0_i32 : i32, i32
  }
  func.func @transform_9(%arg0: i32) -> (i32, i32) {
    %c0_i32 = arith.constant 0 : i32
    %c0_i32_0 = arith.constant 0 : i32
    return %arg0, %c0_i32 : i32, i32
  }
  func.func @transform_10(%arg0: i32) -> (i32, i32) {
    %c0_i32 = arith.constant 0 : i32
    %c0_i32_0 = arith.constant 0 : i32
    return %arg0, %c0_i32 : i32, i32
  }
}

</mosaic_0001>

<bundles_post_ra>
// kernel: tpu_custom_call.1
= control target key start
LH: loop header
LB: loop body
LE: loop exit
PB: predicated region body
PF: predicated region fallthrough
CT: control target
= control target key end

     0   :  { %s2624_s0 = inlined_call_operand.hbm [shape: f32[128,128], index: 0, kind: input, shape index: {}]   ;;  %s2625_s1 = inlined_call_operand.hbm [shape: f32[64,128], index: 1, kind: input, shape index: {}]   ;;  %s2626_s2 = inlined_call_operand.hbm [shape: f32[64,128], index: 2, kind: input, shape index: {}]   ;;  %s2627_s3 = inlined_call_operand.hbm [shape: f32[64,128], index: 3, kind: input, shape index: {}]   ;;  %s2628_s4 = inlined_call_operand.hbm [shape: f32[64,128], index: 4, kind: input, shape index: {}]   ;;  %s2629_s5 = inlined_call_operand.hbm [shape: f32[64,128], index: 5, kind: input, shape index: {}]   ;;  %s2630_s6 = inlined_call_operand.hbm [shape: f32[64,128], index: 6, kind: output, shape index: {0}]   ;;  %s2631_s7 = inlined_call_operand.hbm [shape: f32[64,128], index: 7, kind: output, shape index: {1}]   ;;  %s2632_s8 = inlined_call_operand.hbm [shape: f32[64,128], index: 8, kind: output, shape index: {2}]   ;;  %s2633_s9 = inlined_call_operand.hbm [shape: f32[64,128], index: 9, kind: output, shape index: {3}]   ;;  %s2634_s10 = inlined_call_operand.hbm [shape: f32[64,128], index: 10, kind: output, shape index: {4}]  }
   0x1   :  { %2652 = sst [smem:[#allocation32_spill]] %s2624_s0 }
   0x2   :  { %2653 = sst [smem:[#allocation33_spill]] %s2625_s1 }
   0x3   :  { %2654 = sst [smem:[#allocation34_spill]] %s2627_s3 }
   0x4   :  { %2655 = sst [smem:[#allocation35_spill]] %s2631_s7 }
   0x5   :  { %2656 = sst [smem:[#allocation36_spill]] %s2632_s8 }
   0x6   :  { %2657 = sst [smem:[#allocation37_spill]] %s2634_s10 }
   0x7   :  { %16 = vsyncpa [#allocation3], 0 }
   0x8   :  { %17 = vsyncpa [#allocation6], 0 }
   0x9   :  { %19 = vsyncpa [#allocation6 + $0x1], 0 }
   0xa   :  { %20 = vsyncpa [#allocation9], 0 }
   0xb   :  { %22 = vsyncpa [#allocation9 + $0x1], 0 }
   0xc   :  { %23 = vsyncpa [#allocation12], 0 }
   0xd   :  { %25 = vsyncpa [#allocation12 + $0x1], 0 }
   0xe   :  { %26 = vsyncpa [#allocation4], 0 }
   0xf   :  { %28 = vsyncpa [#allocation4 + $0x1], 0 }
  0x10   :  { %29 = vsyncpa [#allocation15], 0 }
  0x11   :  { %31 = vsyncpa [#allocation15 + $0x1], 0 }
  0x12   :  { %32 = vsyncpa [#allocation18], 0 }
  0x13   :  { %34 = vsyncpa [#allocation18 + $0x1], 0  ;;  %s1941_s13 = smov 0   ;;  %s1943_s14 = smov 0  }
  0x14   :  { %s1945_s15 = smov 0   ;;  %s1947_s16 = smov 0  }
  0x15 LB: > { %2658 = sst [smem:[#allocation27_spill]] %s1867_s13  ;;  %s1962_s17 = sadd.s32 1, %s1879_s16   ;;  %s1879_s16 = sphi %s1947_s16, %s2689_s16   ;;  %s1875_s15 = sphi %s1945_s15, %s2693_s15   ;;  %s1871_s14 = sphi %s1943_s14, %s2692_s14   ;;  %s1867_s13 = sphi %s1941_s13, %s2691_s13  }
  0x16   : > { %2659 = sst [smem:[#allocation28_spill]] %s1879_s16  ;;  %s68_s18 = sadd.s32 1, %s1875_s15 }
  0x17   : > { %2660 = sst [smem:[#allocation29_spill]] %s1962_s17  ;;  %s65_s19 = ssub.s32 %s1879_s16, %s1962_s17 }
  0x18   : > { %p75_p0 = scmp.ne.s32.totalorder %s1875_s15, %s1871_s14  ;;  %p66_p1 = scmp.eq.s32.totalorder %s65_s19, 0 }
  0x19   : > { %p76_p2 = scmp.eq.s32.totalorder %s1879_s16, 0  ;;  %p1441_p4 = scmp.lt.s32.totalorder %s1879_s16, 4 }
  0x1a   : > { %s1971_s20 = scalar_select %p66_p1, %s1875_s15, %s68_s18  }
  0x1b   : > { %p77_p3 = por %p76_p2, %p75_p0  ;;  %s2636_s21 = sand.u32 1, %s1879_s16  }
  0x1c   : > { %2661 = sst [smem:[#allocation30_spill]] %s1971_s20  ;;  %s2635_s22 = sand.u32 1, %s1875_s15  }
  0x1d   : > { %s1981_s23 = sshll.u32 %s2635_s22, 4  ;;  %s1984_s24 = sshll.u32 %s1879_s16, 4 }
  0x1e   : > { %s2662_s1 = sld [smem:[#allocation33_spill]]  ;;  %s357_s29 = scalar_lea.vmem [#allocation5], %s1981_s23 }
  0x1f   : > { %s365_s30 = sshll.u32 %s357_s29, 4  ;;  %p1994_p5 = pnand %p1441_p4, %p77_p3  ;;  %s366_s30 = int_to_ptr.vmem [resolvable:$true] %s365_s30 }
  0x20   : > { %s2664_s3 = sld [smem:[#allocation34_spill]]  ;;  %s2006_s25 = scalar_lea.sflag [#allocation6], %s2636_s21 }
  0x21   : > { %p2010_p7 = pneg %p1994_p5 }
  0x24   : > { %s362_s27 = scalar_lea.hbm %s2662_s1, %s1984_s24 }
  0x25   : > { %s1990_s28 = sshll.u32 %s362_s27, 4  ;;  %s364_s28 = int_to_ptr.hbm [resolvable:$true] %s1990_s28 }
  0x26   : > { %s406_s19 = scalar_lea.hbm %s2664_s3, %s1984_s24  ;;  %s1501_s26 = sshra.s32 %s364_s28, 4  ;;  %s1502_s26 = int_to_ptr.hbm [resolvable:$true] %s1501_s26 }
  0x27   : > { %s2002_s22 = sshll.u32 %s406_s19, 4  ;;  %s1503_s27 = scalar_lea.hbm %s1502_s26, 16  ;;  %s408_s22 = int_to_ptr.hbm [resolvable:$true] %s2002_s22 }
  0x28   : > { %p1504_p6 = scmp.ne.s32.totalorder %s1502_s26, %s1503_s27  ;;  %s1508_s19 = scalar_lea.hbm %s2662_s1, 64 }
  0x29   : > { %p1509_p10 = scmp.lt.s32.totalorder %s1502_s26, %s2662_s1  ;;  %p1510_p11 = scmp.lt.s32.totalorder %s1508_s19, %s1503_s27 }
  0x2a   : > { %p1506_p8 = pnand %p2010_p7, %p1504_p6 }
  0x2b   : > { %p1511_p12 = por %p1510_p11, %p1509_p10 }
  0x2c   : > { %p1507_p9 = pneg %p1506_p8 }
  0x2e   : > { %p1512_p13 = pnand %p1511_p12, %p1507_p9 }
  0x30   : > { %1515 = shalt.err (!%p1512_p13)
}
  0x31   : > { %s2643_s17 = smov 128   ;;  %s2645_s10 = smov 8  }
  0x32   : > { %1411 = dma.hbm_to_vmem [thread:$0]  (!%p1994_p5), %s364_s28, 256, %s366_s30, %s2006_s25, %s2643_s17, %s2643_s17, %s2645_s10  }
  0x33   : > { %s401_s20 = scalar_lea.vmem [#allocation8], %s1981_s23  ;;  %s2666_s26 = sand.u32 1, %s1879_s16  }
  0x34   : > { %s409_s21 = sshll.u32 %s401_s20, 4  ;;  %s2032_s27 = scalar_lea.sflag [#allocation9], %s2666_s26  ;;  %s410_s21 = int_to_ptr.vmem [resolvable:$true] %s409_s21 }
  0x35   : > { %s1531_s12 = sshra.s32 %s408_s22, 4  ;;  %s1538_s8 = scalar_lea.hbm %s2664_s3, 64  ;;  %s1532_s12 = int_to_ptr.hbm [resolvable:$true] %s1531_s12 }
  0x36   : > { %s1533_s18 = scalar_lea.hbm %s1532_s12, 16  ;;  %p1539_p4 = scmp.lt.s32.totalorder %s1532_s12, %s2664_s3 }
  0x37   : > { %p1534_p1 = scmp.ne.s32.totalorder %s1532_s12, %s1533_s18  ;;  %p1540_p6 = scmp.lt.s32.totalorder %s1538_s8, %s1533_s18 }
  0x39   : > { %p1536_p2 = pnand %p1534_p1, %p2010_p7  ;;  %p1541_p8 = por %p1540_p6, %p1539_p4 }
  0x3b   : > { %p1537_p3 = pneg %p1536_p2 }
  0x3d   : > { %p1542_p9 = pnand %p1541_p8, %p1537_p3 }
  0x3f   : > { %1545 = shalt.err (!%p1542_p9)
}
  0x40   : > { %1417 = dma.hbm_to_vmem [thread:$0]  (!%p1994_p5), %s408_s22, 256, %s410_s21, %s2032_s27, %s2643_s17, %s2643_s17, %s2645_s10  }
  0x41   : > { %s2049_s1 = sadd.s32 4294967295, %s1879_s16   ;;  %s2642_s7 = sadd.s32 4294967294, %s1879_s16  }
  0x42   : > { %p81_p10 = scmp.ne.s32.totalorder %s1871_s14, %s1867_s13  ;;  %p2651_p11 = scmp.eq.s32.totalorder %s2049_s1, 0 }
  0x43   : > { %p209_p12 = scmp.eq.s32.totalorder %s2049_s1, 3  ;;  %p215_p13 = scmp.eq.s32.totalorder %s2642_s7, 3 }
  0x44   : > { %p1307_p1 = scmp.ge.s32.totalorder %s1879_s16, 1  ;;  %p2061_p2 = por %p2651_p11, %p81_p10 }
  0x45   : > { %p2068_p3 = por %p209_p12, %p75_p0  ;;  %p2072_p4 = por %p215_p13, %p81_p10 }
  0x46   : > { %p326_p6 = scmp.lt.s32.totalorder %s1879_s16, 5  ;;  %s2671_s0 = sld [smem:[#allocation32_spill]] }
  0x47   : > { %s2669_s30 = scalar_select %p2072_p4, 1, 0 }
  0x48   : > { %p2080_p8 = pnand %p1307_p1, %p326_p6  ;;  %s1883_s18 = smov [#allocation2]  }
  0x49   : > { %2670 = sst [smem:[#allocation31_spill]] %s2669_s30  ;;  %s339_s19 = sshll.u32 %s1883_s18, 4  ;;  %s340_s19 = int_to_ptr.vmem [resolvable:$true] %s339_s19 }
  0x4a   : > { %p1404_p0 = pneg %p2080_p8  ;;  %s384_s17 = scalar_lea.hbm %s2626_s2, %s1984_s24 }
  0x4b   : > { %s385_s20 = sshll.u32 %s384_s17, 4  ;;  %s379_s21 = scalar_lea.vmem [#allocation7], %s1981_s23  ;;  %s386_s20 = int_to_ptr.hbm [resolvable:$true] %s385_s20 }
  0x4c   : > { %s337_s26 = sshll.u32 %s2671_s0, 4  ;;  %p1405_p9 = pnand %p1404_p0, %p2651_p11  ;;  %s338_s26 = int_to_ptr.hbm [resolvable:$true] %s337_s26 }
  0x4d   : > { %s387_s10 = sshll.u32 %s379_s21, 4  ;;  %s2673_s0 = smov 8   ;;  %s388_s10 = int_to_ptr.vmem [resolvable:$true] %s387_s10 }
  0x4e   : > { %s2674_s3 = smov 128   ;;  %s1591_s30 = sshra.s32 %s386_s20, 4  ;;  %s1592_s30 = int_to_ptr.hbm [resolvable:$true] %s1591_s30 }
  0x4f   : > { %1407 = dma.hbm_to_vmem [thread:$0]  (!%p1405_p9), %s338_s26, 2048, %s340_s19, [#allocation3], %s2674_s3, %s2674_s3, %s2673_s0  }
  0x50   : > { %s1593_s13 = scalar_lea.hbm %s1592_s30, 16  ;;  %s1598_s28 = scalar_lea.hbm %s2626_s2, 64 }
  0x51   : > { %p1594_p10 = scmp.ne.s32.totalorder %s1592_s30, %s1593_s13  ;;  %p1599_p1 = scmp.lt.s32.totalorder %s1592_s30, %s2626_s2 }
  0x52   : > { %p1600_p6 = scmp.lt.s32.totalorder %s1598_s28, %s1593_s13 }
  0x53   : > { %p1596_p12 = pnand %p1594_p10, %p2010_p7 }
  0x54   : > { %p1601_p0 = por %p1600_p6, %p1599_p1 }
  0x55   : > { %p1597_p13 = pneg %p1596_p12 }
  0x57   : > { %p1602_p11 = pnand %p1601_p0, %p1597_p13 }
  0x59   : > { %1605 = shalt.err (!%p1602_p11)
}
  0x5a   : > { %1414 = dma.hbm_to_vmem [thread:$0]  (!%p1994_p5), %s386_s20, 256, %s388_s10, %s2006_s25, %s2674_s3, %s2674_s3, %s2673_s0  }
  0x5b   : > { %s428_s21 = scalar_lea.hbm %s2628_s4, %s1984_s24  ;;  %s423_s30 = scalar_lea.vmem [#allocation10], %s1981_s23 }
  0x5c   : > { %s429_s16 = sshll.u32 %s428_s21, 4  ;;  %s431_s13 = sshll.u32 %s423_s30, 4  ;;  %s430_s16 = int_to_ptr.hbm [resolvable:$true] %s429_s16  ;;  %s432_s13 = int_to_ptr.vmem [resolvable:$true] %s431_s13 }
  0x5d   : > { %s1621_s7 = sshra.s32 %s430_s16, 4  ;;  %s1628_s10 = scalar_lea.hbm %s2628_s4, 64  ;;  %s1622_s7 = int_to_ptr.hbm [resolvable:$true] %s1621_s7 }
  0x5e   : > { %s1623_s18 = scalar_lea.hbm %s1622_s7, 16  ;;  %p1629_p12 = scmp.lt.s32.totalorder %s1622_s7, %s2628_s4 }
  0x5f   : > { %p1624_p11 = scmp.ne.s32.totalorder %s1622_s7, %s1623_s18  ;;  %p1630_p13 = scmp.lt.s32.totalorder %s1628_s10, %s1623_s18 }
  0x61   : > { %p1626_p9 = pnand %p1624_p11, %p2010_p7  ;;  %p1631_p1 = por %p1630_p13, %p1629_p12 }
  0x63   : > { %p1627_p10 = pneg %p1626_p9 }
  0x65   : > { %p1632_p6 = pnand %p1631_p1, %p1627_p10 }
  0x67   : > { %1635 = shalt.err (!%p1632_p6)
}
  0x68   : > { %1420 = dma.hbm_to_vmem [thread:$0]  (!%p1994_p5), %s430_s16, 256, %s432_s13, %s2032_s27, %s2674_s3, %s2674_s3, %s2673_s0  }
  0x69   : > { %s450_s21 = scalar_lea.hbm %s2629_s5, %s1984_s24  ;;  %s445_s30 = scalar_lea.vmem [#allocation11], %s1981_s23 }
  0x6a   : > { %s453_s7 = sshll.u32 %s445_s30, 4  ;;  %s451_s18 = sshll.u32 %s450_s21, 4  ;;  %s454_s7 = int_to_ptr.vmem [resolvable:$true] %s453_s7  ;;  %s452_s18 = int_to_ptr.hbm [resolvable:$true] %s451_s18 }
  0x6b   : > { %s2675_s28 = sand.u32 1, %s1875_s15   ;;  %s1651_s10 = sshra.s32 %s452_s18, 4  ;;  %s1652_s10 = int_to_ptr.hbm [resolvable:$true] %s1651_s10 }
  0x6c   : > { %s442_s17 = scalar_lea.sflag [#allocation12], %s2675_s28  ;;  %s1653_s25 = scalar_lea.hbm %s1652_s10, 16 }
  0x6d   : > { %p1654_p0 = scmp.ne.s32.totalorder %s1652_s10, %s1653_s25  ;;  %s1658_s16 = scalar_lea.hbm %s2629_s5, 64 }
  0x6e   : > { %p1659_p10 = scmp.lt.s32.totalorder %s1652_s10, %s2629_s5  ;;  %p1660_p12 = scmp.lt.s32.totalorder %s1658_s16, %s1653_s25 }
  0x6f   : > { %p1656_p11 = pnand %p1654_p0, %p2010_p7 }
  0x70   : > { %p1661_p13 = por %p1660_p12, %p1659_p10 }
  0x71   : > { %p1657_p9 = pneg %p1656_p11 }
  0x73   : > { %p1662_p1 = pnand %p1661_p13, %p1657_p9 }
  0x75   : > { %1665 = shalt.err (!%p1662_p1)
}
  0x76   : > { %1423 = dma.hbm_to_vmem [thread:$0]  (!%p1994_p5), %s452_s18, 256, %s454_s7, %s442_s17, %s2674_s3, %s2674_s3, %s2673_s0  }
  0x77   : > { %465 = sbr.rel (%p2080_p8) target bundleno = 507 (0x1fb), region = 44  ;;  %p2676_p7 = scmp.eq.s32.totalorder (!%p2080_p8), %s2049_s1, 0 }
  0x7c   : > { %1838 = dma.done.wait (%p2676_p7), [#allocation3], 2048   ;;  %p2677_p6 = pmov %p2676_p7 }
  0x7d   : > { %s2156_s23 = sand.u32 1, %s2049_s1   ;;  %s2159_s11 = sand.u32 1, %s1871_s14  }
  0x7e   : > { %1840 = vsyncadd (%p2677_p6), [#allocation3], 4294965248  ;;  %s2162_s29 = sshll.u32 %s2159_s11, 4  ;;  %s473_s0 = scalar_lea.sflag [#allocation6], %s2156_s23 }
  0x7f   : > { %s476_s3 = scalar_lea.vmem [#allocation5], %s2162_s29 }
  0x80   : > { %1842 = dma.done.wait (%p2061_p2), %s473_s0, 512  }
  0x81   : > { %1844 = vsyncadd (%p2061_p2), %s473_s0, 4294966784  ;;  %s486_s12 = scalar_lea.vmem [#allocation7], %s2162_s29  ;;  %s493_s26 = scalar_lea.sflag [#allocation9], %s2156_s23 }
  0x82   : > { %s496_s19 = scalar_lea.vmem [#allocation8], %s2162_s29 }
  0x83   : > { %1846 = dma.done.wait (%p2061_p2), %s493_s26, 512  }
  0x84   : > { %1848 = vsyncadd (%p2061_p2), %s493_s26, 4294966784  ;;  %s506_s21 = scalar_lea.vmem [#allocation10], %s2162_s29  ;;  %s513_s30 = scalar_lea.sflag [#allocation12], %s2159_s11 }
  0x85   : > { %s516_s7 = scalar_lea.vmem [#allocation11], %s2162_s29 }
  0x86   : > { %1850 = dma.done.wait (%p2061_p2), %s513_s30, 256  }
  0x87   : > { %1852 = vsyncadd (%p2061_p2), %s513_s30, 4294967040  ;;  %v2184_v0 = vld [vmem:[#allocation2 + $0x78] sm:$0xff]  ;;  %v2186_v1 = vld [vmem:[#allocation2 + $0x70] sm:$0xff]  ;;  %s2366_s8 = scalar_lea.vmem [#allocation13], %s2162_s29  ;;  %s2370_s18 = sshll.u32 %s2049_s1, 4 }
  0x88   : > { %622 = vmatpush.msra.mxu0 %v2184_v0  ;;  %679 = vmatpush.msra.mxu1 %v2184_v0  ;;  %v2192_v2 = vld [vmem:[#allocation2 + $0x68] sm:$0xff]  ;;  %v2198_v3 = vld [vmem:[#allocation2 + $0x60] sm:$0xff]  ;;  %v2204_v4 = vld [vmem:[#allocation2 + $0x58] sm:$0xff]  ;;  %s2373_s28 = scalar_lea.vmem [#allocation14], %s2162_s29  ;;  %s937_s10 = scalar_lea.hbm %s2630_s6, %s2370_s18 }
  0x89   : > { %793 = vmatpush.msra.mxu3 %v2184_v0  ;;  %736 = vmatpush.msra.mxu2 %v2184_v0  ;;  %v2210_v5 = vld [vmem:[#allocation2 + $0x50] sm:$0xff]  ;;  %v2216_v6 = vld [vmem:[#allocation2 + $0x48] sm:$0xff]  ;;  %v2222_v7 = vld [vmem:[#allocation2 + $0x40] sm:$0xff]  ;;  %s938_s25 = sshll.u32 %s2366_s8, 4  ;;  %s2398_s20 = sshll.u32 %s937_s10, 4  ;;  %s2413_s25 = int_to_ptr.vmem [resolvable:$true] %s938_s25  ;;  %s941_s20 = int_to_ptr.hbm [resolvable:$true] %s2398_s20 }
  0x8a   : > { %623 = vmatpush.msra.mxu0 %v2186_v1  ;;  %680 = vmatpush.msra.mxu1 %v2186_v1  ;;  %v2228_v8 = vld [vmem:[#allocation2 + $0x38] sm:$0xff]  ;;  %v2234_v9 = vld [vmem:[#allocation2 + $0x30] sm:$0xff]  ;;  %v2240_v10 = vld [vmem:[#allocation2 + $0x28] sm:$0xff]  ;;  %s2401_s27 = scalar_lea.vmem [#allocation17], %s2162_s29  ;;  %s988_s24 = scalar_lea.hbm %s2633_s9, %s2370_s18 }
  0x8b   : > { %794 = vmatpush.msra.mxu3 %v2186_v1  ;;  %737 = vmatpush.msra.mxu2 %v2186_v1  ;;  %v2246_v11 = vld [vmem:[#allocation2 + $0x20] sm:$0xff]  ;;  %v2252_v12 = vld [vmem:[#allocation2 + $0x18] sm:$0xff]  ;;  %v606_v13 = vld [vmem:[#allocation2 + $0x10] sm:$0xff]  ;;  %s2419_s0 = scalar_lea.vmem [#allocation16], %s2162_s29  ;;  %s2678_s26 = sld [smem:[#allocation35_spill]] }
  0x8c   : > { %624 = vmatpush.msra.mxu0 %v2192_v2  ;;  %681 = vmatpush.msra.mxu1 %v2192_v2  ;;  %v605_v14 = vld [vmem:[#allocation2 + $0x8] sm:$0xff]  ;;  %v604_v15 = vld [vmem:[#allocation2] sm:$0xff]  ;;  %s989_s30 = sshll.u32 %s2401_s27, 4  ;;  %s1695_s1 = sshra.s32 %s941_s20, 4  ;;  %s1696_s1 = int_to_ptr.hbm [resolvable:$true] %s1695_s1  ;;  %s2482_s30 = int_to_ptr.vmem [resolvable:$true] %s989_s30 }
  0x8d   : > { %795 = vmatpush.msra.mxu3 %v2192_v2  ;;  %738 = vmatpush.msra.mxu2 %v2192_v2  ;;  %v620_v16 = vld [vmem:[%s476_s3] sm:$0xff]  ;;  %v621_v20 = vld [vmem:[%s476_s3 + $0x8] sm:$0xff]  ;;  %s1697_s17 = scalar_lea.hbm %s1696_s1, 16  ;;  %s1701_s13 = scalar_lea.hbm %s2630_s6, 64 }
  0x8e   : > { %625 = vmatpush.msra.mxu0 %v2198_v3  ;;  %682 = vmatpush.msra.mxu1 %v2198_v3  ;;  %v677_v17 = vld [vmem:[%s486_s12] sm:$0xff]  ;;  %v792_v21 = vld [vmem:[%s506_s21 + $0x8] sm:$0xff]  ;;  %p1698_p5 = scmp.ne.s32.totalorder %s1696_s1, %s1697_s17  ;;  %p1702_p0 = scmp.lt.s32.totalorder %s1696_s1, %s2630_s6 }
  0x8f   : > { %796 = vmatpush.msra.mxu3 %v2198_v3  ;;  %739 = vmatpush.msra.mxu2 %v2198_v3  ;;  %v791_v18 = vld [vmem:[%s506_s21] sm:$0xff]  ;;  %v678_v22 = vld [vmem:[%s486_s12 + $0x8] sm:$0xff]  ;;  %s955_s21 = sshll.u32 %s2373_s28, 4  ;;  %p1703_p11 = scmp.lt.s32.totalorder %s1701_s13, %s1697_s17  ;;  %s2491_s21 = int_to_ptr.vmem [resolvable:$true] %s955_s21 }
  0x90   : > { %626 = vmatpush.msra.mxu0 %v2204_v4  ;;  %683 = vmatpush.msra.mxu1 %v2204_v4  ;;  %v734_v19 = vld [vmem:[%s496_s19] sm:$0xff]  ;;  %v735_v23 = vld [vmem:[%s496_s19 + $0x8] sm:$0xff]  ;;  %p1699_p2 = pnand %p1698_p5, %p2068_p3 }
  0x91   : > { %797 = vmatpush.msra.mxu3 %v2204_v4  ;;  %740 = vmatpush.msra.mxu2 %v2204_v4  ;;  %v848_v24 = vld [vmem:[%s516_s7] sm:$0xff]  ;;  %v849_v25 = vld [vmem:[%s516_s7 + $0x8] sm:$0xff]  ;;  %s954_s19 = scalar_lea.hbm %s2678_s26, %s2370_s18  ;;  %s2434_s7 = sshll.u32 %s988_s24, 4  ;;  %s992_s7 = int_to_ptr.hbm [resolvable:$true] %s2434_s7 }
  0x92   : > { %627 = vmatpush.msra.mxu0 %v2210_v5  ;;  %684 = vmatpush.msra.mxu1 %v2210_v5  ;;  %p1700_p8 = pneg %p1699_p2  ;;  %p1704_p9 = por %p1703_p11, %p1702_p0 }
  0x93   : > { %798 = vmatpush.msra.mxu3 %v2210_v5  ;;  %741 = vmatpush.msra.mxu2 %v2210_v5 }
  0x94   : > { %628 = vmatpush.msra.mxu0 %v2216_v6  ;;  %685 = vmatpush.msra.mxu1 %v2216_v6  ;;  %p1705_p10 = pnand %p1704_p9, %p1700_p8 }
  0x95   : > { %799 = vmatpush.msra.mxu3 %v2216_v6  ;;  %742 = vmatpush.msra.mxu2 %v2216_v6 }
  0x96   : > { %629 = vmatpush.msra.mxu0 %v2222_v7  ;;  %686 = vmatpush.msra.mxu1 %v2222_v7 }
  0x97   : > { %800 = vmatpush.msra.mxu3 %v2222_v7  ;;  %743 = vmatpush.msra.mxu2 %v2222_v7 }
  0x98   : > { %630 = vmatpush.msra.mxu0 %v2228_v8  ;;  %687 = vmatpush.msra.mxu1 %v2228_v8 }
  0x99   : > { %801 = vmatpush.msra.mxu3 %v2228_v8  ;;  %744 = vmatpush.msra.mxu2 %v2228_v8 }
  0x9a   : > { %631 = vmatpush.msra.mxu0 %v2234_v9  ;;  %688 = vmatpush.msra.mxu1 %v2234_v9 }
  0x9b   : > { %802 = vmatpush.msra.mxu3 %v2234_v9  ;;  %745 = vmatpush.msra.mxu2 %v2234_v9 }
  0x9c   : > { %632 = vmatpush.msra.mxu0 %v2240_v10  ;;  %689 = vmatpush.msra.mxu1 %v2240_v10 }
  0x9d   : > { %803 = vmatpush.msra.mxu3 %v2240_v10  ;;  %746 = vmatpush.msra.mxu2 %v2240_v10 }
  0x9e   : > { %633 = vmatpush.msra.mxu0 %v2246_v11  ;;  %690 = vmatpush.msra.mxu1 %v2246_v11 }
  0x9f   : > { %804 = vmatpush.msra.mxu3 %v2246_v11  ;;  %747 = vmatpush.msra.mxu2 %v2246_v11 }
  0xa0   : > { %634 = vmatpush.msra.mxu0 %v2252_v12  ;;  %691 = vmatpush.msra.mxu1 %v2252_v12 }
  0xa1   : > { %805 = vmatpush.msra.mxu3 %v2252_v12  ;;  %748 = vmatpush.msra.mxu2 %v2252_v12 }
  0xa2   : > { %635 = vmatpush.msra.mxu0 %v606_v13  ;;  %692 = vmatpush.msra.mxu1 %v606_v13 }
  0xa3   : > { %806 = vmatpush.msra.mxu3 %v606_v13  ;;  %749 = vmatpush.msra.mxu2 %v606_v13 }
  0xa4   : > { %636 = vmatpush.msra.mxu0 %v605_v14  ;;  %693 = vmatpush.msra.mxu1 %v605_v14 }
  0xa5   : > { %807 = vmatpush.msra.mxu3 %v605_v14  ;;  %750 = vmatpush.msra.mxu2 %v605_v14 }
  0xa6   : > { %637 = vmatpush.msra.mxu0 %v604_v15  ;;  %694 = vmatpush.msra.mxu1 %v604_v15 }
  0xa7   : > { %808 = vmatpush.msra.mxu3 %v604_v15  ;;  %638 = vmatmul.f32.vlgmr.msra.gmra.mxu0 %v620_v16 }
  0xa8   : > { %695 = vmatmul.f32.vlgmr.msra.gmra.mxu1 %v677_v17  ;;  %809 = vmatmul.f32.vlgmr.msra.gmra.mxu3 %v791_v18 }
  0xa9   : > { %850 = vmatpush.msrb.mxu0 %v2184_v0  ;;  %1364 = vmatpush.msrb.mxu1 %v2184_v0 }
  0xaa   : > { %751 = vmatpush.msra.mxu2 %v604_v15 }
  0xab   : > { %752 = vmatmul.f32.vlgmr.msra.gmra.mxu2 %v734_v19  ;;  %851 = vmatpush.msrb.mxu0 %v2186_v1 }
  0xac   : > { %1365 = vmatpush.msrb.mxu1 %v2186_v1 }
  0xad   : > { %852 = vmatpush.msrb.mxu0 %v2192_v2 }
  0xae   : > { %1366 = vmatpush.msrb.mxu1 %v2192_v2 }
  0xaf   : > { %853 = vmatpush.msrb.mxu0 %v2198_v3 }
  0xb0   : > { %1367 = vmatpush.msrb.mxu1 %v2198_v3  ;;  %641 = vmatmul.f32.gmra.mxu0 %v621_v20 }
  0xb1   : > { %812 = vmatmul.f32.gmra.mxu3 %v792_v21  ;;  %854 = vmatpush.msrb.mxu0 %v2204_v4 }
  0xb2   : > { %1368 = vmatpush.msrb.mxu1 %v2204_v4 }
  0xb3   : > { %855 = vmatpush.msrb.mxu0 %v2210_v5  ;;  %698 = vmatmul.f32.gmra.mxu1 %v678_v22 }
  0xb4   : > { %1369 = vmatpush.msrb.mxu1 %v2210_v5  ;;  %755 = vmatmul.f32.gmra.mxu2 %v735_v23 }
  0xb5   : > { %856 = vmatpush.msrb.mxu0 %v2216_v6 }
  0xb6   : > { %1370 = vmatpush.msrb.mxu1 %v2216_v6 }
  0xb7   : > { %857 = vmatpush.msrb.mxu0 %v2222_v7 }
  0xb8   : > { %1371 = vmatpush.msrb.mxu1 %v2222_v7 }
  0xb9   : > { %858 = vmatpush.msrb.mxu0 %v2228_v8 }
  0xba   : > { %1372 = vmatpush.msrb.mxu1 %v2228_v8 }
  0xbb   : > { %859 = vmatpush.msrb.mxu0 %v2234_v9 }
  0xbc   : > { %1373 = vmatpush.msrb.mxu1 %v2234_v9 }
  0xbd   : > { %860 = vmatpush.msrb.mxu0 %v2240_v10 }
  0xbe   : > { %1374 = vmatpush.msrb.mxu1 %v2240_v10 }
  0xbf   : > { %861 = vmatpush.msrb.mxu0 %v2246_v11 }
  0xc0   : > { %1375 = vmatpush.msrb.mxu1 %v2246_v11 }
  0xc1   : > { %862 = vmatpush.msrb.mxu0 %v2252_v12 }
  0xc2   : > { %1376 = vmatpush.msrb.mxu1 %v2252_v12 }
  0xc3   : > { %863 = vmatpush.msrb.mxu0 %v606_v13 }
  0xc4   : > { %1377 = vmatpush.msrb.mxu1 %v606_v13 }
  0xc5   : > { %864 = vmatpush.msrb.mxu0 %v605_v14 }
  0xc6   : > { %1378 = vmatpush.msrb.mxu1 %v605_v14 }
  0xc7   : > { %865 = vmatpush.msrb.mxu0 %v604_v15 }
  0xc8   : > { %1379 = vmatpush.msrb.mxu1 %v604_v15  ;;  %866 = vmatmul.f32.vlgmr.msrb.gmra.mxu0 %v848_v24 }
  0xc9   : > { %869 = vmatmul.f32.vlgmr.msrb.gmra.mxu1 %v849_v25 }
 0x124   : > { %v2308_v26 = vpop.f32.mrf.mxu0 }
 0x125   : > { %v2310_v27 = vpop.f32.mrf.mxu1  ;;  %v645_v28 = vmul.f32 %v2308_v26, %v2308_v26 }
 0x126   : > { %v702_v29 = vmul.f32 %v2310_v27, %v2310_v27 }
 0x127   : > { %647 = vadd.xlane.f32.xlu2 %v645_v28 }
 0x128   : > { %704 = vadd.xlane.f32.xlu0 %v702_v29 }
 0x12b   : > { %v2316_v30 = vpop.f32.mrf.mxu3 }
 0x12c   : > { %v816_v31 = vmul.f32 %v2316_v30, %v2316_v30 }
 0x12d   : > { %v2320_v32 = vpop.f32.mrf.mxu0 }
 0x12e   : > { %v2322_v33 = vpop.f32.mrf.mxu2  ;;  %818 = vadd.xlane.f32.xlu1 %v816_v31  ;;  %v646_v34 = vmul.f32 %v2320_v32, %v2320_v32 }
 0x12f   : > { %v759_v35 = vmul.f32 %v2322_v33, %v2322_v33 }
 0x130   : > { %649 = vadd.xlane.f32.xlu2 %v646_v34  ;;  %v2328_v36 = vpop.f32.mrf.mxu1 }
 0x131   : > { %761 = vadd.xlane.f32.xlu0 %v759_v35  ;;  %v703_v39 = vmul.f32 %v2328_v36, %v2328_v36 }
 0x134   : > { %v2330_v37 = vpop.f32.mrf.mxu3 }
 0x135   : > { %v817_v38 = vmul.f32 %v2330_v37, %v2330_v37 }
 0x137   : > { %820 = vadd.xlane.f32.xlu1 %v817_v38  ;;  %v2336_v40 = vpop.f32.mrf.mxu2 }
 0x138   : > { %v760_v41 = vmul.f32 %v2336_v40, %v2336_v40 }
 0x139   : > { %706 = vadd.xlane.f32.xlu0 %v703_v39 }
 0x13f   : > { %763 = vadd.xlane.f32.xlu1 %v760_v41 }
 0x145   : > { %v2340_v42 = vpop.f32.mrf.mxu0 }
 0x146   : > { %v873_v43 = vmul.f32 %v2340_v42, %v2340_v42  ;;  %v2344_v44 = vpop.f32.mrf.mxu1 }
 0x147   : > { %v874_v45 = vmul.f32 %v2344_v44, %v2344_v44 }
 0x148   : > { %875 = vadd.xlane.f32.xlu2 %v873_v43 }
 0x149   : > { %877 = vadd.xlane.f32.xlu0 %v874_v45 }
 0x19a   : > { %v648_v46 = vpop.xlane.xlu2 %647 }
 0x19b   : > { %v705_v47 = vpop.xlane.xlu0 %704  ;;  %v651_v48 = vmax.f32 %v648_v46, 1e-24 }
 0x19c   : > { %v708_v49 = vmax.f32 %v705_v47, 1e-24 }
 0x19d   : > { %1481 = vrsqrt.f32 %v651_v48  ;;  %vm659_vm0 = vweird.f32 %v651_v48 }
 0x19e   : > { %1483 = vrsqrt.f32 %v708_v49  ;;  %vm716_vm2 = vweird.f32 %v708_v49 }
 0x1a1   : > { %v819_v50 = vpop.xlane.xlu1 %818 }
 0x1a2   : > { %v822_v51 = vmax.f32 %v819_v50, 1e-24 }
 0x1a3   : > { %v1482_v52 = vpop.eup %1481  ;;  %v650_v53 = vpop.xlane.xlu2 %649 }
 0x1a4   : > { %v1484_v54 = vpop.eup %1483  ;;  %v654_v55 = vmul.f32 %v1482_v52, %v651_v48  ;;  %1485 = vrsqrt.f32 %v822_v51  ;;  %v762_v56 = vpop.xlane.xlu0 %761  ;;  %v2350_v59 = vmax.f32 %v650_v53, 1e-24  ;;  %vm660_vm1 = vweird.f32 %v1482_v52 }
 0x1a5   : > { %v711_v57 = vmul.f32 %v1484_v54, %v708_v49  ;;  %v2348_v58 = vmax.f32 %v762_v56, 1e-24  ;;  %vm717_vm3 = vweird.f32 %v1484_v54  ;;  %vm661_vm4 = vmor %vm659_vm0, %vm660_vm1  ;;  %vm830_vm6 = vweird.f32 %v822_v51 }
 0x1a6   : > { %v655_v60 = vmul.f32 %v1482_v52, %v654_v55  ;;  %vm718_vm5 = vmor %vm716_vm2, %vm717_vm3  ;;  %vm669_vm8 = vweird.f32 %v2350_v59 }
 0x1a7   : > { %v712_v61 = vmul.f32 %v1484_v54, %v711_v57  ;;  %1487 = vrsqrt.f32 %v2348_v58  ;;  %vm773_vm11 = vweird.f32 %v2348_v58 }
 0x1a8   : > { %v656_v62 = vmul.f32 0.5, %v655_v60  ;;  %1489 = vrsqrt.f32 %v2350_v59 }
 0x1a9   : > { %v713_v63 = vmul.f32 0.5, %v712_v61 }
 0x1aa   : > { %v1486_v0 = vpop.eup %1485  ;;  %v657_v1 = vsub.f32 1.5, %v656_v62  ;;  %v821_v2 = vpop.xlane.xlu1 %820 }
 0x1ab   : > { %v714_v3 = vsub.f32 1.5, %v713_v63  ;;  %v825_v4 = vmul.f32 %v1486_v0, %v822_v51  ;;  %v2354_v5 = vmax.f32 %v821_v2, 1e-24  ;;  %vm831_vm7 = vweird.f32 %v1486_v0 }
 0x1ac   : > { %v658_v6 = vmul.f32 %v1482_v52, %v657_v1  ;;  %v707_v7 = vpop.xlane.xlu0 %706  ;;  %vm832_vm10 = vmor %vm830_vm6, %vm831_vm7 }
 0x1ad   : > { %v1488_v8 = vpop.eup %1487  ;;  %v715_v9 = vmul.f32 %v1484_v54, %v714_v3  ;;  %v826_v10 = vmul.f32 %v1486_v0, %v825_v4  ;;  %1491 = vrsqrt.f32 %v2354_v5  ;;  %v2359_v14 = vmax.f32 %v707_v7, 1e-24 }
 0x1ae   : > { %v1490_v11 = vpop.eup %1489  ;;  %v662_v12 = vsel %vm661_vm4, %v1482_v52, %v658_v6  ;;  %v768_v13 = vmul.f32 %v1488_v8, %v2348_v58  ;;  %vm774_vm12 = vweird.f32 %v1488_v8  ;;  %vm840_vm15 = vweird.f32 %v2354_v5 }
 0x1af   : > { %v719_v15 = vsel %vm718_vm5, %v1484_v54, %v715_v9  ;;  %v673_v16 = vmul.f32 %v662_v12, %v2308_v26  ;;  %v827_v17 = vmul.f32 0.5, %v826_v10  ;;  %v664_v18 = vmul.f32 %v1490_v11, %v2350_v59  ;;  %vm775_vm14 = vmor %vm773_vm11, %vm774_vm12 }
 0x1b0   : > { %v730_v19 = vmul.f32 %v719_v15, %v2310_v27  ;;  %v769_v20 = vmul.f32 %v1488_v8, %v768_v13  ;;  %1493 = vrsqrt.f32 %v2359_v14  ;;  %vm670_vm9 = vweird.f32 %v1490_v11 }
 0x1b1   : > { %675 = vst [vmem:[%s2366_s8] sm:$0xff] %v673_v16  ;;  %v828_v21 = vsub.f32 1.5, %v827_v17  ;;  %v665_v22 = vmul.f32 %v1490_v11, %v664_v18  ;;  %vm671_vm13 = vmor %vm669_vm8, %vm670_vm9  ;;  %vm726_vm2 = vweird.f32 %v2359_v14 }
 0x1b2   : > { %732 = vst [vmem:[%s2373_s28] sm:$0xff] %v730_v19  ;;  %v770_v23 = vmul.f32 0.5, %v769_v20  ;;  %v764_v24 = vpop.xlane.xlu1 %763 }
 0x1b3   : > { %v2377_v25 = vpop.eup %1491  ;;  %v829_v26 = vmul.f32 %v1486_v0, %v828_v21  ;;  %v666_v27 = vmul.f32 0.5, %v665_v22  ;;  %v2379_v28 = vmax.f32 %v764_v24, 1e-24 }
 0x1b4   : > { %v771_v29 = vsub.f32 1.5, %v770_v23  ;;  %v835_v31 = vmul.f32 %v2377_v25, %v2354_v5  ;;  %vm841_vm0 = vweird.f32 %v2377_v25 }
 0x1b5   : > { %v833_v34 = vsel %vm832_vm10, %v1486_v0, %v829_v26  ;;  %v667_v35 = vsub.f32 1.5, %v666_v27  ;;  %1495 = vrsqrt.f32 %v2379_v28  ;;  %vm2440_vm1 = vmor %vm840_vm15, %vm841_vm0 }
 0x1b6   : > { %v2389_v38 = vpop.eup %1493  ;;  %v844_v39 = vmul.f32 %v833_v34, %v2316_v30  ;;  %v772_v41 = vmul.f32 %v1488_v8, %v771_v29  ;;  %v836_v43 = vmul.f32 %v2377_v25, %v835_v31 }
 0x1b7   : > { %v668_v45 = vmul.f32 %v1490_v11, %v667_v35  ;;  %v721_v46 = vmul.f32 %v2389_v38, %v2359_v14  ;;  %vm727_vm3 = vweird.f32 %v2389_v38 }
 0x1b8   : > { %846 = vst [vmem:[%s2401_s27] sm:$0xff] %v844_v39  ;;  %v776_v30 = vsel %vm775_vm14, %v1488_v8, %v772_v41  ;;  %v837_v47 = vmul.f32 0.5, %v836_v43 }
 0x1b9   : > { %v787_v48 = vmul.f32 %v776_v30, %v2322_v33  ;;  %v672_v49 = vsel %vm671_vm13, %v1490_v11, %v668_v45  ;;  %v722_v50 = vmul.f32 %v2389_v38, %v721_v46 }
 0x1ba   : > { %v674_v51 = vmul.f32 %v672_v49, %v2320_v32  ;;  %v838_v52 = vsub.f32 1.5, %v837_v47 }
 0x1bb   : > { %v2416_v53 = vpop.eup %1495  ;;  %789 = vst [vmem:[%s2419_s0] sm:$0xff] %v787_v48  ;;  %v723_v33 = vmul.f32 0.5, %v722_v50  ;;  %v876_v54 = vpop.xlane.xlu2 %875 }
 0x1bc   : > { %676 = vst [vmem:[%s2366_s8 + $0x8] sm:$0xff] %v674_v51  ;;  %v839_v32 = vmul.f32 %v2377_v25, %v838_v52  ;;  %v778_v55 = vmul.f32 %v2416_v53, %v2379_v28  ;;  %v878_v56 = vpop.xlane.xlu0 %877  ;;  %v2431_v57 = vmax.f32 %v876_v54, 1e-24  ;;  %s906_s8 = scalar_lea.sflag [#allocation4], %s2159_s11 }
 0x1bd   : > { %v724_v59 = vsub.f32 1.5, %v723_v33  ;;  %v2446_v60 = vmax.f32 %v878_v56, 1e-24 }
 0x1be   : > { %1708 = shalt.err (!%p1705_p10)
}
 0x1bf   : > { %s1884_s11 = smov 128   ;;  %s1885_s12 = smov 8   ;;  %v843_v61 = vsel %vm2440_vm1, %v2377_v25, %v839_v32  ;;  %v779_v62 = vmul.f32 %v2416_v53, %v778_v55  ;;  %1497 = vrsqrt.f32 %v2431_v57  ;;  %v725_v0 = vmul.f32 %v2389_v38, %v724_v59  ;;  %vm728_vm4 = vmor %vm726_vm2, %vm727_vm3 }
 0x1c0   : > { %1394 = dma.vmem_to_hbm [thread:$0]  (%p2068_p3), %s2413_s25, 256, %s941_s20, %s906_s8, %s1884_s11, %s1884_s11, %s1885_s12   ;;  %v845_v63 = vmul.f32 %v843_v61, %v2330_v37  ;;  %1499 = vrsqrt.f32 %v2446_v60  ;;  %vm783_vm5 = vweird.f32 %v2379_v28  ;;  %vm784_vm6 = vweird.f32 %v2416_v53 }
 0x1c1   : > { %s2477_s10 = sshll.u32 %s954_s19, 4  ;;  %v780_v1 = vmul.f32 0.5, %v779_v62  ;;  %v729_v37 = vsel %vm728_vm4, %v2389_v38, %v725_v0  ;;  %s2681_s19 = sld [smem:[#allocation36_spill]]  ;;  %s958_s10 = int_to_ptr.hbm [resolvable:$true] %s2477_s10 }
 0x1c2   : > { %847 = vst [vmem:[%s2401_s27 + $0x8] sm:$0xff] %v845_v63  ;;  %v731_v2 = vmul.f32 %v729_v37, %v2328_v36  ;;  %s921_s16 = scalar_lea.sflag [#allocation18], %s2156_s23  ;;  %s1723_s13 = sshra.s32 %s992_s7, 4  ;;  %s1724_s13 = int_to_ptr.hbm [resolvable:$true] %s1723_s13 }
 0x1c3   : > { %v781_v3 = vsub.f32 1.5, %v780_v1  ;;  %s1725_s24 = scalar_lea.hbm %s1724_s13, 16  ;;  %s1729_s1 = scalar_lea.hbm %s2633_s9, 64 }
 0x1c4   : > { %p1726_p12 = scmp.ne.s32.totalorder %s1724_s13, %s1725_s24  ;;  %p1730_p7 = scmp.lt.s32.totalorder %s1724_s13, %s2633_s9 }
 0x1c5   : > { %p1731_p6 = scmp.lt.s32.totalorder %s1729_s1, %s1725_s24 }
 0x1c6   : > { %p1727_p13 = pnand %p1726_p12, %p2068_p3 }
 0x1c7   : > { %s971_s8 = scalar_lea.hbm %s2681_s19, %s2370_s18  ;;  %p1732_p5 = por %p1731_p6, %p1730_p7 }
 0x1c8   : > { %p1728_p1 = pneg %p1727_p13 }
 0x1ca   : > { %p1733_p2 = pnand %p1732_p5, %p1728_p1 }
 0x1cc   : > { %1736 = shalt.err (!%p1733_p2)
}
 0x1cd   : > { %1397 = dma.vmem_to_hbm [thread:$0]  (%p2068_p3), %s2482_s30, 256, %s992_s7, %s921_s16, %s1884_s11, %s1884_s11, %s1885_s12   ;;  %v1498_v36 = vpop.eup %1497  ;;  %v782_v4 = vmul.f32 %v2416_v53, %v781_v3  ;;  %vm2533_vm7 = vmor %vm783_vm5, %vm784_vm6 }
 0x1ce   : > { %s972_s20 = sshll.u32 %s2419_s0, 4  ;;  %733 = vst [vmem:[%s2373_s28 + $0x8] sm:$0xff] %v731_v2  ;;  %s2527_s13 = sshll.u32 %s971_s8, 4  ;;  %v1500_v5 = vpop.eup %1499  ;;  %v882_v7 = vmul.f32 %v1498_v36, %v2431_v57  ;;  %s973_s20 = int_to_ptr.vmem [resolvable:$true] %s972_s20  ;;  %s975_s13 = int_to_ptr.hbm [resolvable:$true] %s2527_s13 }
 0x1cf   : > { %s911_s24 = scalar_lea.sflag [#allocation15], %s2156_s23  ;;  %s1751_s30 = sshra.s32 %s958_s10, 4  ;;  %s1752_s30 = int_to_ptr.hbm [resolvable:$true] %s1751_s30 }
 0x1d0   : > { %s1753_s28 = scalar_lea.hbm %s1752_s30, 16  ;;  %s1757_s27 = scalar_lea.hbm %s2678_s26, 64 }
 0x1d1   : > { %p1754_p8 = scmp.ne.s32.totalorder %s1752_s30, %s1753_s28  ;;  %p1758_p9 = scmp.lt.s32.totalorder %s1752_s30, %s2678_s26 }
 0x1d2   : > { %p1759_p10 = scmp.lt.s32.totalorder %s1757_s27, %s1753_s28 }
 0x1d3   : > { %p1755_p0 = pnand %p1754_p8, %p2068_p3 }
 0x1d4   : > { %p1760_p12 = por %p1759_p10, %p1758_p9 }
 0x1d5   : > { %p1756_p11 = pneg %p1755_p0 }
 0x1d7   : > { %p1761_p13 = pnand %p1760_p12, %p1756_p11 }
 0x1d9   : > { %1764 = shalt.err (!%p1761_p13)
}
 0x1da   : > { %1395 = dma.vmem_to_hbm [thread:$0]  (%p2068_p3), %s2491_s21, 256, %s958_s10, %s911_s24, %s1884_s11, %s1884_s11, %s1885_s12   ;;  %v786_v8 = vsel %vm2533_vm7, %v2416_v53, %v782_v4  ;;  %v892_v9 = vmul.f32 %v1500_v5, %v2446_v60  ;;  %v883_v11 = vmul.f32 %v1498_v36, %v882_v7 }
 0x1db   : > { %v788_v10 = vmul.f32 %v786_v8, %v2336_v40  ;;  %s1779_s17 = sshra.s32 %s975_s13, 4  ;;  %s1785_s30 = scalar_lea.hbm %s2681_s19, 64  ;;  %s1780_s17 = int_to_ptr.hbm [resolvable:$true] %s1779_s17 }
 0x1dc   : > { %v893_v12 = vmul.f32 %v1500_v5, %v892_v9  ;;  %v884_v13 = vmul.f32 0.5, %v883_v11  ;;  %s1781_s25 = scalar_lea.hbm %s1780_s17, 16  ;;  %p1786_p5 = scmp.lt.s32.totalorder %s1780_s17, %s2681_s19 }
 0x1dd   : > { %790 = vst [vmem:[%s2419_s0 + $0x8] sm:$0xff] %v788_v10  ;;  %p1782_p1 = scmp.ne.s32.totalorder %s1780_s17, %s1781_s25  ;;  %p1787_p2 = scmp.lt.s32.totalorder %s1785_s30, %s1781_s25 }
 0x1de   : > { %v894_v14 = vmul.f32 0.5, %v893_v12 }
 0x1df   : > { %p1783_p7 = pnand %p1782_p1, %p2068_p3  ;;  %p1788_p8 = por %p1787_p2, %p1786_p5 }
 0x1e1   : > { %p1784_p6 = pneg %p1783_p7 }
 0x1e3   : > { %p1789_p0 = pnand %p1788_p8, %p1784_p6 }
 0x1e5   : > { %1792 = shalt.err (!%p1789_p0)
}
 0x1e6   : > { %1396 = dma.vmem_to_hbm [thread:$0]  (%p2068_p3), %s973_s20, 256, %s975_s13, %s911_s24, %s1884_s11, %s1884_s11, %s1885_s12   ;;  %v885_v40 = vsub.f32 1.5, %v884_v13  ;;  %vm888_vm8 = vweird.f32 %v1498_v36  ;;  %v895_v15 = vsub.f32 1.5, %v894_v14  ;;  %vm898_vm9 = vweird.f32 %v1500_v5 }
 0x1e7   : > { %s2684_s27 = sld [smem:[#allocation37_spill]]  ;;  %vm887_vm10 = vweird.f32 %v2431_v57  ;;  %s593_s1 = scalar_lea.vmem [#allocation19], %s2162_s29  ;;  %vm897_vm11 = vweird.f32 %v2446_v60 }
 0x1e8   : > { %v886_v16 = vmul.f32 %v1498_v36, %v885_v40  ;;  %s1006_s17 = sshll.u32 %s593_s1, 4  ;;  %v896_v17 = vmul.f32 %v1500_v5, %v895_v15  ;;  %vm889_vm12 = vmor %vm887_vm10, %vm888_vm8  ;;  %s1007_s17 = int_to_ptr.vmem [resolvable:$true] %s1006_s17 }
 0x1e9   : > { %vm899_vm13 = vmor %vm897_vm11, %vm898_vm9 }
 0x1ea   : > { %v890_v18 = vsel %vm889_vm12, %v1498_v36, %v886_v16  ;;  %v900_v19 = vsel %vm899_vm13, %v1500_v5, %v896_v17 }
 0x1eb   : > { %v901_v20 = vmul.f32 %v890_v18, %v2340_v42  ;;  %v902_v21 = vmul.f32 %v900_v19, %v2344_v44 }
 0x1ed   : > { %s1005_s3 = scalar_lea.hbm %s2684_s27, %s2370_s18  ;;  %903 = vst [vmem:[%s593_s1] sm:$0xff] %v901_v20  ;;  %s1813_s24 = scalar_lea.hbm %s2684_s27, 64 }
 0x1ee   : > { %s1008_s25 = sshll.u32 %s1005_s3, 4  ;;  %904 = vst [vmem:[%s593_s1 + $0x8] sm:$0xff] %v902_v21  ;;  %s1009_s25 = int_to_ptr.hbm [resolvable:$true] %s1008_s25 }
 0x1ef   : > { %s1807_s18 = sshra.s32 %s1009_s25, 4  ;;  %s1808_s18 = int_to_ptr.hbm [resolvable:$true] %s1807_s18 }
 0x1f0   : > { %s1809_s29 = scalar_lea.hbm %s1808_s18, 16  ;;  %p1814_p12 = scmp.lt.s32.totalorder %s1808_s18, %s2684_s27 }
 0x1f1   : > { %p1810_p11 = scmp.ne.s32.totalorder %s1808_s18, %s1809_s29  ;;  %p1815_p13 = scmp.lt.s32.totalorder %s1813_s24, %s1809_s29 }
 0x1f3   : > { %p1811_p9 = pnand %p1810_p11, %p2068_p3  ;;  %p1816_p1 = por %p1815_p13, %p1814_p12 }
 0x1f5   : > { %p1812_p10 = pneg %p1811_p9 }
 0x1f7   : > { %p1817_p7 = pnand %p1816_p1, %p1812_p10 }
 0x1f9   : > { %1820 = shalt.err (!%p1817_p7)
}
 0x1fa   : > { %1398 = dma.vmem_to_hbm [thread:$0]  (%p2068_p3), %s1007_s17, 256, %s1009_s25, %s921_s16, %s1884_s11, %s1884_s11, %s1885_s12  }
 0x1fb PF: > { %s2685_s30 = sld [smem:[#allocation28_spill]] }
 0x1fc   : > { %s2686_s28 = sld [smem:[#allocation27_spill]] }
 0x201   : > { %p1443_p6 = scmp.ge.s32.totalorder %s2685_s30, 2 }
 0x202   : > { %s1023_s0 = sand.u32 1, %s2686_s28  }
 0x203   : > { %p1425_p5 = pnand %p1443_p6, %p2072_p4  ;;  %s1024_s8 = scalar_lea.sflag [#allocation4], %s1023_s0 }
 0x205   : > { %p1426_p2 = pneg %p1425_p5 }
 0x207   : > { %1854 = dma.done.wait (%p1426_p2), %s1024_s8, 256  }
 0x208   : > { %1856 = vsyncadd (%p1426_p2), %s1024_s8, 4294967040  ;;  %s2688_s22 = sadd.s32 4294967294, %s2685_s30  }
 0x209   : > { %s1033_s3 = sand.u32 1, %s2688_s22  }
 0x20a   : > { %s1034_s1 = scalar_lea.sflag [#allocation15], %s1033_s3 }
 0x20b   : > { %1858 = dma.done.wait (%p1426_p2), %s1034_s1, 512  }
 0x20c   : > { %1860 = vsyncadd (%p1426_p2), %s1034_s1, 4294966784  ;;  %s1054_s23 = scalar_lea.sflag [#allocation18], %s1033_s3 }
 0x20d   : > { %1862 = dma.done.wait (%p1426_p2), %s1054_s23, 512  }
 0x20e   : > { %1864 = vsyncadd (%p1426_p2), %s1054_s23, 4294966784  ;;  %s2689_s16 = sld [smem:[#allocation29_spill]]  ;;  %s2691_s13 = smov %s1871_s14 }
 0x20f   : > { %s2690_s11 = sld [smem:[#allocation30_spill]]  ;;  %s2692_s14 = smov %s1875_s15 }
 0x214   : > { %p37_p3 = scmp.ge.s32.totalorder %s2689_s16, 6  }
 0x215   : > { %s2693_s15 = smov %s2690_s11 }
 0x216   :  { %39 = sbr.rel (!%p37_p3) target bundleno = 21 (0x15), region = 206 }
 0x21b   :  { %1070 = vsyncpa [#allocation3], 1 }
 0x21c   :  { %1072 = vsyncpa [#allocation3 + $0x1], 1 }
 0x21d   :  { %1073 = vsyncpa [#allocation6], 1 }
 0x21e   :  { %1075 = vsyncpa [#allocation6 + $0x1], 1 }
 0x21f   :  { %1076 = vsyncpa [#allocation9], 1 }
 0x220   :  { %1078 = vsyncpa [#allocation9 + $0x1], 1 }
 0x221   :  { %1079 = vsyncpa [#allocation12], 1 }
 0x222   :  { %1081 = vsyncpa [#allocation12 + $0x1], 1 }
 0x223   :  { %1082 = vsyncpa [#allocation4], 1 }
 0x224   :  { %1084 = vsyncpa [#allocation4 + $0x1], 1 }
 0x225   :  { %1085 = vsyncpa [#allocation15], 1 }
 0x226   :  { %1087 = vsyncpa [#allocation15 + $0x1], 1 }
 0x227   :  { %1088 = vsyncpa [#allocation18], 1 }
 0x228   :  { %1090 = vsyncpa [#allocation18 + $0x1], 1 }

// kernel: tpu_custom_call.1
= control target key start
LH: loop header
LB: loop body
LE: loop exit
PB: predicated region body
PF: predicated region fallthrough
CT: control target
= control target key end

     0   :  { %s2624_s0 = inlined_call_operand.hbm [shape: f32[128,128], index: 0, kind: input, shape index: {}]   ;;  %s2625_s1 = inlined_call_operand.hbm [shape: f32[64,128], index: 1, kind: input, shape index: {}]   ;;  %s2626_s2 = inlined_call_operand.hbm [shape: f32[64,128], index: 2, kind: input, shape index: {}]   ;;  %s2627_s3 = inlined_call_operand.hbm [shape: f32[64,128], index: 3, kind: input, shape index: {}]   ;;  %s2628_s4 = inlined_call_operand.hbm [shape: f32[64,128], index: 4, kind: input, shape index: {}]   ;;  %s2629_s5 = inlined_call_operand.hbm [shape: f32[64,128], index: 5, kind: input, shape index: {}]   ;;  %s2630_s6 = inlined_call_operand.hbm [shape: f32[64,128], index: 6, kind: output, shape index: {0}]   ;;  %s2631_s7 = inlined_call_operand.hbm [shape: f32[64,128], index: 7, kind: output, shape index: {1}]   ;;  %s2632_s8 = inlined_call_operand.hbm [shape: f32[64,128], index: 8, kind: output, shape index: {2}]   ;;  %s2633_s9 = inlined_call_operand.hbm [shape: f32[64,128], index: 9, kind: output, shape index: {3}]   ;;  %s2634_s10 = inlined_call_operand.hbm [shape: f32[64,128], index: 10, kind: output, shape index: {4}]  }
   0x1   :  { %2652 = sst [smem:[#allocation32_spill]] %s2624_s0 }
   0x2   :  { %2653 = sst [smem:[#allocation33_spill]] %s2625_s1 }
   0x3   :  { %2654 = sst [smem:[#allocation34_spill]] %s2627_s3 }
   0x4   :  { %2655 = sst [smem:[#allocation35_spill]] %s2631_s7 }
   0x5   :  { %2656 = sst [smem:[#allocation36_spill]] %s2632_s8 }
   0x6   :  { %2657 = sst [smem:[#allocation37_spill]] %s2634_s10 }
   0x7   :  { %16 = vsyncpa [#allocation3], 0 }
   0x8   :  { %17 = vsyncpa [#allocation6], 0 }
   0x9   :  { %19 = vsyncpa [#allocation6 + $0x1], 0 }
   0xa   :  { %20 = vsyncpa [#allocation9], 0 }
   0xb   :  { %22 = vsyncpa [#allocation9 + $0x1], 0 }
   0xc   :  { %23 = vsyncpa [#allocation12], 0 }
   0xd   :  { %25 = vsyncpa [#allocation12 + $0x1], 0 }
   0xe   :  { %26 = vsyncpa [#allocation4], 0 }
   0xf   :  { %28 = vsyncpa [#allocation4 + $0x1], 0 }
  0x10   :  { %29 = vsyncpa [#allocation15], 0 }
  0x11   :  { %31 = vsyncpa [#allocation15 + $0x1], 0 }
  0x12   :  { %32 = vsyncpa [#allocation18], 0 }
  0x13   :  { %34 = vsyncpa [#allocation18 + $0x1], 0  ;;  %s1941_s13 = smov 0   ;;  %s1943_s14 = smov 0  }
  0x14   :  { %s1945_s15 = smov 0   ;;  %s1947_s16 = smov 0  }
  0x15 LB: > { %2658 = sst [smem:[#allocation27_spill]] %s1867_s13  ;;  %s1962_s17 = sadd.s32 1, %s1879_s16   ;;  %s1879_s16 = sphi %s1947_s16, %s2689_s16   ;;  %s1875_s15 = sphi %s1945_s15, %s2693_s15   ;;  %s1871_s14 = sphi %s1943_s14, %s2692_s14   ;;  %s1867_s13 = sphi %s1941_s13, %s2691_s13  }
  0x16   : > { %2659 = sst [smem:[#allocation28_spill]] %s1879_s16  ;;  %s68_s18 = sadd.s32 1, %s1875_s15 }
  0x17   : > { %2660 = sst [smem:[#allocation29_spill]] %s1962_s17  ;;  %s65_s19 = ssub.s32 %s1879_s16, %s1962_s17 }
  0x18   : > { %p75_p0 = scmp.ne.s32.totalorder %s1875_s15, %s1871_s14  ;;  %p66_p1 = scmp.eq.s32.totalorder %s65_s19, 0 }
  0x19   : > { %p76_p2 = scmp.eq.s32.totalorder %s1879_s16, 0  ;;  %p1441_p4 = scmp.lt.s32.totalorder %s1879_s16, 4 }
  0x1a   : > { %s1971_s20 = scalar_select %p66_p1, %s1875_s15, %s68_s18  }
  0x1b   : > { %p77_p3 = por %p76_p2, %p75_p0  ;;  %s2636_s21 = sand.u32 1, %s1879_s16  }
  0x1c   : > { %2661 = sst [smem:[#allocation30_spill]] %s1971_s20  ;;  %s2635_s22 = sand.u32 1, %s1875_s15  }
  0x1d   : > { %s1981_s23 = sshll.u32 %s2635_s22, 4  ;;  %s1984_s24 = sshll.u32 %s1879_s16, 4 }
  0x1e   : > { %s2662_s1 = sld [smem:[#allocation33_spill]]  ;;  %s357_s29 = scalar_lea.vmem [#allocation5], %s1981_s23 }
  0x1f   : > { %s365_s30 = sshll.u32 %s357_s29, 4  ;;  %p1994_p5 = pnand %p1441_p4, %p77_p3  ;;  %s366_s30 = int_to_ptr.vmem [resolvable:$true] %s365_s30 }
  0x20   : > { %s2664_s3 = sld [smem:[#allocation34_spill]]  ;;  %s2006_s25 = scalar_lea.sflag [#allocation6], %s2636_s21 }
  0x21   : > { %p2010_p7 = pneg %p1994_p5 }
  0x24   : > { %s362_s27 = scalar_lea.hbm %s2662_s1, %s1984_s24 }
  0x25   : > { %s1990_s28 = sshll.u32 %s362_s27, 4  ;;  %s364_s28 = int_to_ptr.hbm [resolvable:$true] %s1990_s28 }
  0x26   : > { %s406_s19 = scalar_lea.hbm %s2664_s3, %s1984_s24  ;;  %s1501_s26 = sshra.s32 %s364_s28, 4  ;;  %s1502_s26 = int_to_ptr.hbm [resolvable:$true] %s1501_s26 }
  0x27   : > { %s2002_s22 = sshll.u32 %s406_s19, 4  ;;  %s1503_s27 = scalar_lea.hbm %s1502_s26, 16  ;;  %s408_s22 = int_to_ptr.hbm [resolvable:$true] %s2002_s22 }
  0x28   : > { %p1504_p6 = scmp.ne.s32.totalorder %s1502_s26, %s1503_s27  ;;  %s1508_s19 = scalar_lea.hbm %s2662_s1, 64 }
  0x29   : > { %p1509_p10 = scmp.lt.s32.totalorder %s1502_s26, %s2662_s1  ;;  %p1510_p11 = scmp.lt.s32.totalorder %s1508_s19, %s1503_s27 }
  0x2a   : > { %p1506_p8 = pnand %p2010_p7, %p1504_p6 }
  0x2b   : > { %p1511_p12 = por %p1510_p11, %p1509_p10 }
  0x2c   : > { %p1507_p9 = pneg %p1506_p8 }
  0x2e   : > { %p1512_p13 = pnand %p1511_p12, %p1507_p9 }
  0x30   : > { %1515 = shalt.err (!%p1512_p13)
}
  0x31   : > { %s2643_s17 = smov 128   ;;  %s2645_s10 = smov 8  }
  0x32   : > { %1411 = dma.hbm_to_vmem [thread:$0]  (!%p1994_p5), %s364_s28, 256, %s366_s30, %s2006_s25, %s2643_s17, %s2643_s17, %s2645_s10  }
  0x33   : > { %s401_s20 = scalar_lea.vmem [#allocation8], %s1981_s23  ;;  %s2666_s26 = sand.u32 1, %s1879_s16  }
  0x34   : > { %s409_s21 = sshll.u32 %s401_s20, 4  ;;  %s2032_s27 = scalar_lea.sflag [#allocation9], %s2666_s26  ;;  %s410_s21 = int_to_ptr.vmem [resolvable:$true] %s409_s21 }
  0x35   : > { %s1531_s12 = sshra.s32 %s408_s22, 4  ;;  %s1538_s8 = scalar_lea.hbm %s2664_s3, 64  ;;  %s1532_s12 = int_to_ptr.hbm [resolvable:$true] %s1531_s12 }
  0x36   : > { %s1533_s18 = scalar_lea.hbm %s1532_s12, 16  ;;  %p1539_p4 = scmp.lt.s32.totalorder %s1532_s12, %s2664_s3 }
  0x37   : > { %p1534_p1 = scmp.ne.s32.totalorder %s1532_s12, %s1533_s18  ;;  %p1540_p6 = scmp.lt.s32.totalorder %s1538_s8, %s1533_s18 }
  0x39   : > { %p1536_p2 = pnand %p1534_p1, %p2010_p7  ;;  %p1541_p8 = por %p1540_p6, %p1539_p4 }
  0x3b   : > { %p1537_p3 = pneg %p1536_p2 }
  0x3d   : > { %p1542_p9 = pnand %p1541_p8, %p1537_p3 }
  0x3f   : > { %1545 = shalt.err (!%p1542_p9)
}
  0x40   : > { %1417 = dma.hbm_to_vmem [thread:$0]  (!%p1994_p5), %s408_s22, 256, %s410_s21, %s2032_s27, %s2643_s17, %s2643_s17, %s2645_s10  }
  0x41   : > { %s2049_s1 = sadd.s32 4294967295, %s1879_s16   ;;  %s2642_s7 = sadd.s32 4294967294, %s1879_s16  }
  0x42   : > { %p81_p10 = scmp.ne.s32.totalorder %s1871_s14, %s1867_s13  ;;  %p2651_p11 = scmp.eq.s32.totalorder %s2049_s1, 0 }
  0x43   : > { %p209_p12 = scmp.eq.s32.totalorder %s2049_s1, 3  ;;  %p215_p13 = scmp.eq.s32.totalorder %s2642_s7, 3 }
  0x44   : > { %p1307_p1 = scmp.ge.s32.totalorder %s1879_s16, 1  ;;  %p2061_p2 = por %p2651_p11, %p81_p10 }
  0x45   : > { %p2068_p3 = por %p209_p12, %p75_p0  ;;  %p2072_p4 = por %p215_p13, %p81_p10 }
  0x46   : > { %p326_p6 = scmp.lt.s32.totalorder %s1879_s16, 5  ;;  %s2671_s0 = sld [smem:[#allocation32_spill]] }
  0x47   : > { %s2669_s30 = scalar_select %p2072_p4, 1, 0 }
  0x48   : > { %p2080_p8 = pnand %p1307_p1, %p326_p6  ;;  %s1883_s18 = smov [#allocation2]  }
  0x49   : > { %2670 = sst [smem:[#allocation31_spill]] %s2669_s30  ;;  %s339_s19 = sshll.u32 %s1883_s18, 4  ;;  %s340_s19 = int_to_ptr.vmem [resolvable:$true] %s339_s19 }
  0x4a   : > { %p1404_p0 = pneg %p2080_p8  ;;  %s384_s17 = scalar_lea.hbm %s2626_s2, %s1984_s24 }
  0x4b   : > { %s385_s20 = sshll.u32 %s384_s17, 4  ;;  %s379_s21 = scalar_lea.vmem [#allocation7], %s1981_s23  ;;  %s386_s20 = int_to_ptr.hbm [resolvable:$true] %s385_s20 }
  0x4c   : > { %s337_s26 = sshll.u32 %s2671_s0, 4  ;;  %p1405_p9 = pnand %p1404_p0, %p2651_p11  ;;  %s338_s26 = int_to_ptr.hbm [resolvable:$true] %s337_s26 }
  0x4d   : > { %s387_s10 = sshll.u32 %s379_s21, 4  ;;  %s2673_s0 = smov 8   ;;  %s388_s10 = int_to_ptr.vmem [resolvable:$true] %s387_s10 }
  0x4e   : > { %s2674_s3 = smov 128   ;;  %s1591_s30 = sshra.s32 %s386_s20, 4  ;;  %s1592_s30 = int_to_ptr.hbm [resolvable:$true] %s1591_s30 }
  0x4f   : > { %1407 = dma.hbm_to_vmem [thread:$0]  (!%p1405_p9), %s338_s26, 2048, %s340_s19, [#allocation3], %s2674_s3, %s2674_s3, %s2673_s0  }
  0x50   : > { %s1593_s13 = scalar_lea.hbm %s1592_s30, 16  ;;  %s1598_s28 = scalar_lea.hbm %s2626_s2, 64 }
  0x51   : > { %p1594_p10 = scmp.ne.s32.totalorder %s1592_s30, %s1593_s13  ;;  %p1599_p1 = scmp.lt.s32.totalorder %s1592_s30, %s2626_s2 }
  0x52   : > { %p1600_p6 = scmp.lt.s32.totalorder %s1598_s28, %s1593_s13 }
  0x53   : > { %p1596_p12 = pnand %p1594_p10, %p2010_p7 }
  0x54   : > { %p1601_p0 = por %p1600_p6, %p1599_p1 }
  0x55   : > { %p1597_p13 = pneg %p1596_p12 }
  0x57   : > { %p1602_p11 = pnand %p1601_p0, %p1597_p13 }
  0x59   : > { %1605 = shalt.err (!%p1602_p11)
}
  0x5a   : > { %1414 = dma.hbm_to_vmem [thread:$0]  (!%p1994_p5), %s386_s20, 256, %s388_s10, %s2006_s25, %s2674_s3, %s2674_s3, %s2673_s0  }
  0x5b   : > { %s428_s21 = scalar_lea.hbm %s2628_s4, %s1984_s24  ;;  %s423_s30 = scalar_lea.vmem [#allocation10], %s1981_s23 }
  0x5c   : > { %s429_s16 = sshll.u32 %s428_s21, 4  ;;  %s431_s13 = sshll.u32 %s423_s30, 4  ;;  %s430_s16 = int_to_ptr.hbm [resolvable:$true] %s429_s16  ;;  %s432_s13 = int_to_ptr.vmem [resolvable:$true] %s431_s13 }
  0x5d   : > { %s1621_s7 = sshra.s32 %s430_s16, 4  ;;  %s1628_s10 = scalar_lea.hbm %s2628_s4, 64  ;;  %s1622_s7 = int_to_ptr.hbm [resolvable:$true] %s1621_s7 }
  0x5e   : > { %s1623_s18 = scalar_lea.hbm %s1622_s7, 16  ;;  %p1629_p12 = scmp.lt.s32.totalorder %s1622_s7, %s2628_s4 }
  0x5f   : > { %p1624_p11 = scmp.ne.s32.totalorder %s1622_s7, %s1623_s18  ;;  %p1630_p13 = scmp.lt.s32.totalorder %s1628_s10, %s1623_s18 }
  0x61   : > { %p1626_p9 = pnand %p1624_p11, %p2010_p7  ;;  %p1631_p1 = por %p1630_p13, %p1629_p12 }
  0x63   : > { %p1627_p10 = pneg %p1626_p9 }
  0x65   : > { %p1632_p6 = pnand %p1631_p1, %p1627_p10 }
  0x67   : > { %1635 = shalt.err (!%p1632_p6)
}
  0x68   : > { %1420 = dma.hbm_to_vmem [thread:$0]  (!%p1994_p5), %s430_s16, 256, %s432_s13, %s2032_s27, %s2674_s3, %s2674_s3, %s2673_s0  }
  0x69   : > { %s450_s21 = scalar_lea.hbm %s2629_s5, %s1984_s24  ;;  %s445_s30 = scalar_lea.vmem [#allocation11], %s1981_s23 }
  0x6a   : > { %s453_s7 = sshll.u32 %s445_s30, 4  ;;  %s451_s18 = sshll.u32 %s450_s21, 4  ;;  %s454_s7 = int_to_ptr.vmem [resolvable:$true] %s453_s7  ;;  %s452_s18 = int_to_ptr.hbm [resolvable:$true] %s451_s18 }
  0x6b   : > { %s2675_s28 = sand.u32 1, %s1875_s15   ;;  %s1651_s10 = sshra.s32 %s452_s18, 4  ;;  %s1652_s10 = int_to_ptr.hbm [resolvable:$true] %s1651_s10 }
  0x6c   : > { %s442_s17 = scalar_lea.sflag [#allocation12], %s2675_s28  ;;  %s1653_s25 = scalar_lea.hbm %s1652_s10, 16 }
  0x6d   : > { %p1654_p0 = scmp.ne.s32.totalorder %s1652_s10, %s1653_s25  ;;  %s1658_s16 = scalar_lea.hbm %s2629_s5, 64 }
  0x6e   : > { %p1659_p10 = scmp.lt.s32.totalorder %s1652_s10, %s2629_s5  ;;  %p1660_p12 = scmp.lt.s32.totalorder %s1658_s16, %s1653_s25 }
  0x6f   : > { %p1656_p11 = pnand %p1654_p0, %p2010_p7 }
  0x70   : > { %p1661_p13 = por %p1660_p12, %p1659_p10 }
  0x71   : > { %p1657_p9 = pneg %p1656_p11 }
  0x73   : > { %p1662_p1 = pnand %p1661_p13, %p1657_p9 }
  0x75   : > { %1665 = shalt.err (!%p1662_p1)
}
  0x76   : > { %1423 = dma.hbm_to_vmem [thread:$0]  (!%p1994_p5), %s452_s18, 256, %s454_s7, %s442_s17, %s2674_s3, %s2674_s3, %s2673_s0  }
  0x77   : > { %465 = sbr.rel (%p2080_p8) target bundleno = 507 (0x1fb), region = 44  ;;  %p2676_p7 = scmp.eq.s32.totalorder (!%p2080_p8), %s2049_s1, 0 }
  0x7c   : > { %1838 = dma.done.wait (%p2676_p7), [#allocation3], 2048   ;;  %p2677_p6 = pmov %p2676_p7 }
  0x7d   : > { %s2156_s23 = sand.u32 1, %s2049_s1   ;;  %s2159_s11 = sand.u32 1, %s1871_s14  }
  0x7e   : > { %1840 = vsyncadd (%p2677_p6), [#allocation3], 4294965248  ;;  %s2162_s29 = sshll.u32 %s2159_s11, 4  ;;  %s473_s0 = scalar_lea.sflag [#allocation6], %s2156_s23 }
  0x7f   : > { %s476_s3 = scalar_lea.vmem [#allocation5], %s2162_s29 }
  0x80   : > { %1842 = dma.done.wait (%p2061_p2), %s473_s0, 512  }
  0x81   : > { %1844 = vsyncadd (%p2061_p2), %s473_s0, 4294966784  ;;  %s486_s12 = scalar_lea.vmem [#allocation7], %s2162_s29  ;;  %s493_s26 = scalar_lea.sflag [#allocation9], %s2156_s23 }
  0x82   : > { %s496_s19 = scalar_lea.vmem [#allocation8], %s2162_s29 }
  0x83   : > { %1846 = dma.done.wait (%p2061_p2), %s493_s26, 512  }
  0x84   : > { %1848 = vsyncadd (%p2061_p2), %s493_s26, 4294966784  ;;  %s506_s21 = scalar_lea.vmem [#allocation10], %s2162_s29  ;;  %s513_s30 = scalar_lea.sflag [#allocation12], %s2159_s11 }
  0x85   : > { %s516_s7 = scalar_lea.vmem [#allocation11], %s2162_s29 }
  0x86   : > { %1850 = dma.done.wait (%p2061_p2), %s513_s30, 256  }
  0x87   : > { %1852 = vsyncadd (%p2061_p2), %s513_s30, 4294967040  ;;  %v2184_v0 = vld [vmem:[#allocation2 + $0x78] sm:$0xff]  ;;  %v2186_v1 = vld [vmem:[#allocation2 + $0x70] sm:$0xff]  ;;  %s2366_s8 = scalar_lea.vmem [#allocation13], %s2162_s29  ;;  %s2370_s18 = sshll.u32 %s2049_s1, 4 }
  0x88   : > { %622 = vmatpush.msra.mxu0 %v2184_v0  ;;  %679 = vmatpush.msra.mxu1 %v2184_v0  ;;  %v2192_v2 = vld [vmem:[#allocation2 + $0x68] sm:$0xff]  ;;  %v2198_v3 = vld [vmem:[#allocation2 + $0x60] sm:$0xff]  ;;  %v2204_v4 = vld [vmem:[#allocation2 + $0x58] sm:$0xff]  ;;  %s2373_s28 = scalar_lea.vmem [#allocation14], %s2162_s29  ;;  %s937_s10 = scalar_lea.hbm %s2630_s6, %s2370_s18 }
  0x89   : > { %793 = vmatpush.msra.mxu3 %v2184_v0  ;;  %736 = vmatpush.msra.mxu2 %v2184_v0  ;;  %v2210_v5 = vld [vmem:[#allocation2 + $0x50] sm:$0xff]  ;;  %v2216_v6 = vld [vmem:[#allocation2 + $0x48] sm:$0xff]  ;;  %v2222_v7 = vld [vmem:[#allocation2 + $0x40] sm:$0xff]  ;;  %s938_s25 = sshll.u32 %s2366_s8, 4  ;;  %s2398_s20 = sshll.u32 %s937_s10, 4  ;;  %s2413_s25 = int_to_ptr.vmem [resolvable:$true] %s938_s25  ;;  %s941_s20 = int_to_ptr.hbm [resolvable:$true] %s2398_s20 }
  0x8a   : > { %623 = vmatpush.msra.mxu0 %v2186_v1  ;;  %680 = vmatpush.msra.mxu1 %v2186_v1  ;;  %v2228_v8 = vld [vmem:[#allocation2 + $0x38] sm:$0xff]  ;;  %v2234_v9 = vld [vmem:[#allocation2 + $0x30] sm:$0xff]  ;;  %v2240_v10 = vld [vmem:[#allocation2 + $0x28] sm:$0xff]  ;;  %s2401_s27 = scalar_lea.vmem [#allocation17], %s2162_s29  ;;  %s988_s24 = scalar_lea.hbm %s2633_s9, %s2370_s18 }
  0x8b   : > { %794 = vmatpush.msra.mxu3 %v2186_v1  ;;  %737 = vmatpush.msra.mxu2 %v2186_v1  ;;  %v2246_v11 = vld [vmem:[#allocation2 + $0x20] sm:$0xff]  ;;  %v2252_v12 = vld [vmem:[#allocation2 + $0x18] sm:$0xff]  ;;  %v606_v13 = vld [vmem:[#allocation2 + $0x10] sm:$0xff]  ;;  %s2419_s0 = scalar_lea.vmem [#allocation16], %s2162_s29  ;;  %s2678_s26 = sld [smem:[#allocation35_spill]] }
  0x8c   : > { %624 = vmatpush.msra.mxu0 %v2192_v2  ;;  %681 = vmatpush.msra.mxu1 %v2192_v2  ;;  %v605_v14 = vld [vmem:[#allocation2 + $0x8] sm:$0xff]  ;;  %v604_v15 = vld [vmem:[#allocation2] sm:$0xff]  ;;  %s989_s30 = sshll.u32 %s2401_s27, 4  ;;  %s1695_s1 = sshra.s32 %s941_s20, 4  ;;  %s1696_s1 = int_to_ptr.hbm [resolvable:$true] %s1695_s1  ;;  %s2482_s30 = int_to_ptr.vmem [resolvable:$true] %s989_s30 }
  0x8d   : > { %795 = vmatpush.msra.mxu3 %v2192_v2  ;;  %738 = vmatpush.msra.mxu2 %v2192_v2  ;;  %v620_v16 = vld [vmem:[%s476_s3] sm:$0xff]  ;;  %v621_v20 = vld [vmem:[%s476_s3 + $0x8] sm:$0xff]  ;;  %s1697_s17 = scalar_lea.hbm %s1696_s1, 16  ;;  %s1701_s13 = scalar_lea.hbm %s2630_s6, 64 }
  0x8e   : > { %625 = vmatpush.msra.mxu0 %v2198_v3  ;;  %682 = vmatpush.msra.mxu1 %v2198_v3  ;;  %v677_v17 = vld [vmem:[%s486_s12] sm:$0xff]  ;;  %v792_v21 = vld [vmem:[%s506_s21 + $0x8] sm:$0xff]  ;;  %p1698_p5 = scmp.ne.s32.totalorder %s1696_s1, %s1697_s17  ;;  %p1702_p0 = scmp.lt.s32.totalorder %s1696_s1, %s2630_s6 }
  0x8f   : > { %796 = vmatpush.msra.mxu3 %v2198_v3  ;;  %739 = vmatpush.msra.mxu2 %v2198_v3  ;;  %v791_v18 = vld [vmem:[%s506_s21] sm:$0xff]  ;;  %v678_v22 = vld [vmem:[%s486_s12 + $0x8] sm:$0xff]  ;;  %s955_s21 = sshll.u32 %s2373_s28, 4  ;;  %p1703_p11 = scmp.lt.s32.totalorder %s1701_s13, %s1697_s17  ;;  %s2491_s21 = int_to_ptr.vmem [resolvable:$true] %s955_s21 }
  0x90   : > { %626 = vmatpush.msra.mxu0 %v2204_v4  ;;  %683 = vmatpush.msra.mxu1 %v2204_v4  ;;  %v734_v19 = vld [vmem:[%s496_s19] sm:$0xff]  ;;  %v735_v23 = vld [vmem:[%s496_s19 + $0x8] sm:$0xff]  ;;  %p1699_p2 = pnand %p1698_p5, %p2068_p3 }
  0x91   : > { %797 = vmatpush.msra.mxu3 %v2204_v4  ;;  %740 = vmatpush.msra.mxu2 %v2204_v4  ;;  %v848_v24 = vld [vmem:[%s516_s7] sm:$0xff]  ;;  %v849_v25 = vld [vmem:[%s516_s7 + $0x8] sm:$0xff]  ;;  %s954_s19 = scalar_lea.hbm %s2678_s26, %s2370_s18  ;;  %s2434_s7 = sshll.u32 %s988_s24, 4  ;;  %s992_s7 = int_to_ptr.hbm [resolvable:$true] %s2434_s7 }
  0x92   : > { %627 = vmatpush.msra.mxu0 %v2210_v5  ;;  %684 = vmatpush.msra.mxu1 %v2210_v5  ;;  %p1700_p8 = pneg %p1699_p2  ;;  %p1704_p9 = por %p1703_p11, %p1702_p0 }
  0x93   : > { %798 = vmatpush.msra.mxu3 %v2210_v5  ;;  %741 = vmatpush.msra.mxu2 %v2210_v5 }
  0x94   : > { %628 = vmatpush.msra.mxu0 %v2216_v6  ;;  %685 = vmatpush.msra.mxu1 %v2216_v6  ;;  %p1705_p10 = pnand %p1704_p9, %p1700_p8 }
  0x95   : > { %799 = vmatpush.msra.mxu3 %v2216_v6  ;;  %742 = vmatpush.msra.mxu2 %v2216_v6 }
  0x96   : > { %629 = vmatpush.msra.mxu0 %v2222_v7  ;;  %686 = vmatpush.msra.mxu1 %v2222_v7 }
  0x97   : > { %800 = vmatpush.msra.mxu3 %v2222_v7  ;;  %743 = vmatpush.msra.mxu2 %v2222_v7 }
  0x98   : > { %630 = vmatpush.msra.mxu0 %v2228_v8  ;;  %687 = vmatpush.msra.mxu1 %v2228_v8 }
  0x99   : > { %801 = vmatpush.msra.mxu3 %v2228_v8  ;;  %744 = vmatpush.msra.mxu2 %v2228_v8 }
  0x9a   : > { %631 = vmatpush.msra.mxu0 %v2234_v9  ;;  %688 = vmatpush.msra.mxu1 %v2234_v9 }
  0x9b   : > { %802 = vmatpush.msra.mxu3 %v2234_v9  ;;  %745 = vmatpush.msra.mxu2 %v2234_v9 }
  0x9c   : > { %632 = vmatpush.msra.mxu0 %v2240_v10  ;;  %689 = vmatpush.msra.mxu1 %v2240_v10 }
  0x9d   : > { %803 = vmatpush.msra.mxu3 %v2240_v10  ;;  %746 = vmatpush.msra.mxu2 %v2240_v10 }
  0x9e   : > { %633 = vmatpush.msra.mxu0 %v2246_v11  ;;  %690 = vmatpush.msra.mxu1 %v2246_v11 }
  0x9f   : > { %804 = vmatpush.msra.mxu3 %v2246_v11  ;;  %747 = vmatpush.msra.mxu2 %v2246_v11 }
  0xa0   : > { %634 = vmatpush.msra.mxu0 %v2252_v12  ;;  %691 = vmatpush.msra.mxu1 %v2252_v12 }
  0xa1   : > { %805 = vmatpush.msra.mxu3 %v2252_v12  ;;  %748 = vmatpush.msra.mxu2 %v2252_v12 }
  0xa2   : > { %635 = vmatpush.msra.mxu0 %v606_v13  ;;  %692 = vmatpush.msra.mxu1 %v606_v13 }
  0xa3   : > { %806 = vmatpush.msra.mxu3 %v606_v13  ;;  %749 = vmatpush.msra.mxu2 %v606_v13 }
  0xa4   : > { %636 = vmatpush.msra.mxu0 %v605_v14  ;;  %693 = vmatpush.msra.mxu1 %v605_v14 }
  0xa5   : > { %807 = vmatpush.msra.mxu3 %v605_v14  ;;  %750 = vmatpush.msra.mxu2 %v605_v14 }
  0xa6   : > { %637 = vmatpush.msra.mxu0 %v604_v15  ;;  %694 = vmatpush.msra.mxu1 %v604_v15 }
  0xa7   : > { %808 = vmatpush.msra.mxu3 %v604_v15  ;;  %638 = vmatmul.f32.vlgmr.msra.gmra.mxu0 %v620_v16 }
  0xa8   : > { %695 = vmatmul.f32.vlgmr.msra.gmra.mxu1 %v677_v17  ;;  %809 = vmatmul.f32.vlgmr.msra.gmra.mxu3 %v791_v18 }
  0xa9   : > { %850 = vmatpush.msrb.mxu0 %v2184_v0  ;;  %1364 = vmatpush.msrb.mxu1 %v2184_v0 }
  0xaa   : > { %751 = vmatpush.msra.mxu2 %v604_v15 }
  0xab   : > { %752 = vmatmul.f32.vlgmr.msra.gmra.mxu2 %v734_v19  ;;  %851 = vmatpush.msrb.mxu0 %v2186_v1 }
  0xac   : > { %1365 = vmatpush.msrb.mxu1 %v2186_v1 }
  0xad   : > { %852 = vmatpush.msrb.mxu0 %v2192_v2 }
  0xae   : > { %1366 = vmatpush.msrb.mxu1 %v2192_v2 }
  0xaf   : > { %853 = vmatpush.msrb.mxu0 %v2198_v3 }
  0xb0   : > { %1367 = vmatpush.msrb.mxu1 %v2198_v3  ;;  %641 = vmatmul.f32.gmra.mxu0 %v621_v20 }
  0xb1   : > { %812 = vmatmul.f32.gmra.mxu3 %v792_v21  ;;  %854 = vmatpush.msrb.mxu0 %v2204_v4 }
  0xb2   : > { %1368 = vmatpush.msrb.mxu1 %v2204_v4 }
  0xb3   : > { %855 = vmatpush.msrb.mxu0 %v2210_v5  ;;  %698 = vmatmul.f32.gmra.mxu1 %v678_v22 }
  0xb4   : > { %1369 = vmatpush.msrb.mxu1 %v2210_v5  ;;  %755 = vmatmul.f32.gmra.mxu2 %v735_v23 }
  0xb5   : > { %856 = vmatpush.msrb.mxu0 %v2216_v6 }
  0xb6   : > { %1370 = vmatpush.msrb.mxu1 %v2216_v6 }
  0xb7   : > { %857 = vmatpush.msrb.mxu0 %v2222_v7 }
  0xb8   : > { %1371 = vmatpush.msrb.mxu1 %v2222_v7 }
  0xb9   : > { %858 = vmatpush.msrb.mxu0 %v2228_v8 }
  0xba   : > { %1372 = vmatpush.msrb.mxu1 %v2228_v8 }
  0xbb   : > { %859 = vmatpush.msrb.mxu0 %v2234_v9 }
  0xbc   : > { %1373 = vmatpush.msrb.mxu1 %v2234_v9 }
  0xbd   : > { %860 = vmatpush.msrb.mxu0 %v2240_v10 }
  0xbe   : > { %1374 = vmatpush.msrb.mxu1 %v2240_v10 }
  0xbf   : > { %861 = vmatpush.msrb.mxu0 %v2246_v11 }
  0xc0   : > { %1375 = vmatpush.msrb.mxu1 %v2246_v11 }
  0xc1   : > { %862 = vmatpush.msrb.mxu0 %v2252_v12 }
  0xc2   : > { %1376 = vmatpush.msrb.mxu1 %v2252_v12 }
  0xc3   : > { %863 = vmatpush.msrb.mxu0 %v606_v13 }
  0xc4   : > { %1377 = vmatpush.msrb.mxu1 %v606_v13 }
  0xc5   : > { %864 = vmatpush.msrb.mxu0 %v605_v14 }
  0xc6   : > { %1378 = vmatpush.msrb.mxu1 %v605_v14 }
  0xc7   : > { %865 = vmatpush.msrb.mxu0 %v604_v15 }
  0xc8   : > { %1379 = vmatpush.msrb.mxu1 %v604_v15  ;;  %866 = vmatmul.f32.vlgmr.msrb.gmra.mxu0 %v848_v24 }
  0xc9   : > { %869 = vmatmul.f32.vlgmr.msrb.gmra.mxu1 %v849_v25 }
 0x124   : > { %v2308_v26 = vpop.f32.mrf.mxu0 }
 0x125   : > { %v2310_v27 = vpop.f32.mrf.mxu1  ;;  %v645_v28 = vmul.f32 %v2308_v26, %v2308_v26 }
 0x126   : > { %v702_v29 = vmul.f32 %v2310_v27, %v2310_v27 }
 0x127   : > { %647 = vadd.xlane.f32.xlu2 %v645_v28 }
 0x128   : > { %704 = vadd.xlane.f32.xlu0 %v702_v29 }
 0x12b   : > { %v2316_v30 = vpop.f32.mrf.mxu3 }
 0x12c   : > { %v816_v31 = vmul.f32 %v2316_v30, %v2316_v30 }
 0x12d   : > { %v2320_v32 = vpop.f32.mrf.mxu0 }
 0x12e   : > { %v2322_v33 = vpop.f32.mrf.mxu2  ;;  %818 = vadd.xlane.f32.xlu1 %v816_v31  ;;  %v646_v34 = vmul.f32 %v2320_v32, %v2320_v32 }
 0x12f   : > { %v759_v35 = vmul.f32 %v2322_v33, %v2322_v33 }
 0x130   : > { %649 = vadd.xlane.f32.xlu2 %v646_v34  ;;  %v2328_v36 = vpop.f32.mrf.mxu1 }
 0x131   : > { %761 = vadd.xlane.f32.xlu0 %v759_v35  ;;  %v703_v39 = vmul.f32 %v2328_v36, %v2328_v36 }
 0x134   : > { %v2330_v37 = vpop.f32.mrf.mxu3 }
 0x135   : > { %v817_v38 = vmul.f32 %v2330_v37, %v2330_v37 }
 0x137   : > { %820 = vadd.xlane.f32.xlu1 %v817_v38  ;;  %v2336_v40 = vpop.f32.mrf.mxu2 }
 0x138   : > { %v760_v41 = vmul.f32 %v2336_v40, %v2336_v40 }
 0x139   : > { %706 = vadd.xlane.f32.xlu0 %v703_v39 }
 0x13f   : > { %763 = vadd.xlane.f32.xlu1 %v760_v41 }
 0x145   : > { %v2340_v42 = vpop.f32.mrf.mxu0 }
 0x146   : > { %v873_v43 = vmul.f32 %v2340_v42, %v2340_v42  ;;  %v2344_v44 = vpop.f32.mrf.mxu1 }
 0x147   : > { %v874_v45 = vmul.f32 %v2344_v44, %v2344_v44 }
 0x148   : > { %875 = vadd.xlane.f32.xlu2 %v873_v43 }
 0x149   : > { %877 = vadd.xlane.f32.xlu0 %v874_v45 }
 0x19a   : > { %v648_v46 = vpop.xlane.xlu2 %647 }
 0x19b   : > { %v705_v47 = vpop.xlane.xlu0 %704  ;;  %v651_v48 = vmax.f32 %v648_v46, 1e-24 }
 0x19c   : > { %v708_v49 = vmax.f32 %v705_v47, 1e-24 }
 0x19d   : > { %1481 = vrsqrt.f32 %v651_v48  ;;  %vm659_vm0 = vweird.f32 %v651_v48 }
 0x19e   : > { %1483 = vrsqrt.f32 %v708_v49  ;;  %vm716_vm2 = vweird.f32 %v708_v49 }
 0x1a1   : > { %v819_v50 = vpop.xlane.xlu1 %818 }
 0x1a2   : > { %v822_v51 = vmax.f32 %v819_v50, 1e-24 }
 0x1a3   : > { %v1482_v52 = vpop.eup %1481  ;;  %v650_v53 = vpop.xlane.xlu2 %649 }
 0x1a4   : > { %v1484_v54 = vpop.eup %1483  ;;  %v654_v55 = vmul.f32 %v1482_v52, %v651_v48  ;;  %1485 = vrsqrt.f32 %v822_v51  ;;  %v762_v56 = vpop.xlane.xlu0 %761  ;;  %v2350_v59 = vmax.f32 %v650_v53, 1e-24  ;;  %vm660_vm1 = vweird.f32 %v1482_v52 }
 0x1a5   : > { %v711_v57 = vmul.f32 %v1484_v54, %v708_v49  ;;  %v2348_v58 = vmax.f32 %v762_v56, 1e-24  ;;  %vm717_vm3 = vweird.f32 %v1484_v54  ;;  %vm661_vm4 = vmor %vm659_vm0, %vm660_vm1  ;;  %vm830_vm6 = vweird.f32 %v822_v51 }
 0x1a6   : > { %v655_v60 = vmul.f32 %v1482_v52, %v654_v55  ;;  %vm718_vm5 = vmor %vm716_vm2, %vm717_vm3  ;;  %vm669_vm8 = vweird.f32 %v2350_v59 }
 0x1a7   : > { %v712_v61 = vmul.f32 %v1484_v54, %v711_v57  ;;  %1487 = vrsqrt.f32 %v2348_v58  ;;  %vm773_vm11 = vweird.f32 %v2348_v58 }
 0x1a8   : > { %v656_v62 = vmul.f32 0.5, %v655_v60  ;;  %1489 = vrsqrt.f32 %v2350_v59 }
 0x1a9   : > { %v713_v63 = vmul.f32 0.5, %v712_v61 }
 0x1aa   : > { %v1486_v0 = vpop.eup %1485  ;;  %v657_v1 = vsub.f32 1.5, %v656_v62  ;;  %v821_v2 = vpop.xlane.xlu1 %820 }
 0x1ab   : > { %v714_v3 = vsub.f32 1.5, %v713_v63  ;;  %v825_v4 = vmul.f32 %v1486_v0, %v822_v51  ;;  %v2354_v5 = vmax.f32 %v821_v2, 1e-24  ;;  %vm831_vm7 = vweird.f32 %v1486_v0 }
 0x1ac   : > { %v658_v6 = vmul.f32 %v1482_v52, %v657_v1  ;;  %v707_v7 = vpop.xlane.xlu0 %706  ;;  %vm832_vm10 = vmor %vm830_vm6, %vm831_vm7 }
 0x1ad   : > { %v1488_v8 = vpop.eup %1487  ;;  %v715_v9 = vmul.f32 %v1484_v54, %v714_v3  ;;  %v826_v10 = vmul.f32 %v1486_v0, %v825_v4  ;;  %1491 = vrsqrt.f32 %v2354_v5  ;;  %v2359_v14 = vmax.f32 %v707_v7, 1e-24 }
 0x1ae   : > { %v1490_v11 = vpop.eup %1489  ;;  %v662_v12 = vsel %vm661_vm4, %v1482_v52, %v658_v6  ;;  %v768_v13 = vmul.f32 %v1488_v8, %v2348_v58  ;;  %vm774_vm12 = vweird.f32 %v1488_v8  ;;  %vm840_vm15 = vweird.f32 %v2354_v5 }
 0x1af   : > { %v719_v15 = vsel %vm718_vm5, %v1484_v54, %v715_v9  ;;  %v673_v16 = vmul.f32 %v662_v12, %v2308_v26  ;;  %v827_v17 = vmul.f32 0.5, %v826_v10  ;;  %v664_v18 = vmul.f32 %v1490_v11, %v2350_v59  ;;  %vm775_vm14 = vmor %vm773_vm11, %vm774_vm12 }
 0x1b0   : > { %v730_v19 = vmul.f32 %v719_v15, %v2310_v27  ;;  %v769_v20 = vmul.f32 %v1488_v8, %v768_v13  ;;  %1493 = vrsqrt.f32 %v2359_v14  ;;  %vm670_vm9 = vweird.f32 %v1490_v11 }
 0x1b1   : > { %675 = vst [vmem:[%s2366_s8] sm:$0xff] %v673_v16  ;;  %v828_v21 = vsub.f32 1.5, %v827_v17  ;;  %v665_v22 = vmul.f32 %v1490_v11, %v664_v18  ;;  %vm671_vm13 = vmor %vm669_vm8, %vm670_vm9  ;;  %vm726_vm2 = vweird.f32 %v2359_v14 }
 0x1b2   : > { %732 = vst [vmem:[%s2373_s28] sm:$0xff] %v730_v19  ;;  %v770_v23 = vmul.f32 0.5, %v769_v20  ;;  %v764_v24 = vpop.xlane.xlu1 %763 }
 0x1b3   : > { %v2377_v25 = vpop.eup %1491  ;;  %v829_v26 = vmul.f32 %v1486_v0, %v828_v21  ;;  %v666_v27 = vmul.f32 0.5, %v665_v22  ;;  %v2379_v28 = vmax.f32 %v764_v24, 1e-24 }
 0x1b4   : > { %v771_v29 = vsub.f32 1.5, %v770_v23  ;;  %v835_v31 = vmul.f32 %v2377_v25, %v2354_v5  ;;  %vm841_vm0 = vweird.f32 %v2377_v25 }
 0x1b5   : > { %v833_v34 = vsel %vm832_vm10, %v1486_v0, %v829_v26  ;;  %v667_v35 = vsub.f32 1.5, %v666_v27  ;;  %1495 = vrsqrt.f32 %v2379_v28  ;;  %vm2440_vm1 = vmor %vm840_vm15, %vm841_vm0 }
 0x1b6   : > { %v2389_v38 = vpop.eup %1493  ;;  %v844_v39 = vmul.f32 %v833_v34, %v2316_v30  ;;  %v772_v41 = vmul.f32 %v1488_v8, %v771_v29  ;;  %v836_v43 = vmul.f32 %v2377_v25, %v835_v31 }
 0x1b7   : > { %v668_v45 = vmul.f32 %v1490_v11, %v667_v35  ;;  %v721_v46 = vmul.f32 %v2389_v38, %v2359_v14  ;;  %vm727_vm3 = vweird.f32 %v2389_v38 }
 0x1b8   : > { %846 = vst [vmem:[%s2401_s27] sm:$0xff] %v844_v39  ;;  %v776_v30 = vsel %vm775_vm14, %v1488_v8, %v772_v41  ;;  %v837_v47 = vmul.f32 0.5, %v836_v43 }
 0x1b9   : > { %v787_v48 = vmul.f32 %v776_v30, %v2322_v33  ;;  %v672_v49 = vsel %vm671_vm13, %v1490_v11, %v668_v45  ;;  %v722_v50 = vmul.f32 %v2389_v38, %v721_v46 }
 0x1ba   : > { %v674_v51 = vmul.f32 %v672_v49, %v2320_v32  ;;  %v838_v52 = vsub.f32 1.5, %v837_v47 }
 0x1bb   : > { %v2416_v53 = vpop.eup %1495  ;;  %789 = vst [vmem:[%s2419_s0] sm:$0xff] %v787_v48  ;;  %v723_v33 = vmul.f32 0.5, %v722_v50  ;;  %v876_v54 = vpop.xlane.xlu2 %875 }
 0x1bc   : > { %676 = vst [vmem:[%s2366_s8 + $0x8] sm:$0xff] %v674_v51  ;;  %v839_v32 = vmul.f32 %v2377_v25, %v838_v52  ;;  %v778_v55 = vmul.f32 %v2416_v53, %v2379_v28  ;;  %v878_v56 = vpop.xlane.xlu0 %877  ;;  %v2431_v57 = vmax.f32 %v876_v54, 1e-24  ;;  %s906_s8 = scalar_lea.sflag [#allocation4], %s2159_s11 }
 0x1bd   : > { %v724_v59 = vsub.f32 1.5, %v723_v33  ;;  %v2446_v60 = vmax.f32 %v878_v56, 1e-24 }
 0x1be   : > { %1708 = shalt.err (!%p1705_p10)
}
 0x1bf   : > { %s1884_s11 = smov 128   ;;  %s1885_s12 = smov 8   ;;  %v843_v61 = vsel %vm2440_vm1, %v2377_v25, %v839_v32  ;;  %v779_v62 = vmul.f32 %v2416_v53, %v778_v55  ;;  %1497 = vrsqrt.f32 %v2431_v57  ;;  %v725_v0 = vmul.f32 %v2389_v38, %v724_v59  ;;  %vm728_vm4 = vmor %vm726_vm2, %vm727_vm3 }
 0x1c0   : > { %1394 = dma.vmem_to_hbm [thread:$0]  (%p2068_p3), %s2413_s25, 256, %s941_s20, %s906_s8, %s1884_s11, %s1884_s11, %s1885_s12   ;;  %v845_v63 = vmul.f32 %v843_v61, %v2330_v37  ;;  %1499 = vrsqrt.f32 %v2446_v60  ;;  %vm783_vm5 = vweird.f32 %v2379_v28  ;;  %vm784_vm6 = vweird.f32 %v2416_v53 }
 0x1c1   : > { %s2477_s10 = sshll.u32 %s954_s19, 4  ;;  %v780_v1 = vmul.f32 0.5, %v779_v62  ;;  %v729_v37 = vsel %vm728_vm4, %v2389_v38, %v725_v0  ;;  %s2681_s19 = sld [smem:[#allocation36_spill]]  ;;  %s958_s10 = int_to_ptr.hbm [resolvable:$true] %s2477_s10 }
 0x1c2   : > { %847 = vst [vmem:[%s2401_s27 + $0x8] sm:$0xff] %v845_v63  ;;  %v731_v2 = vmul.f32 %v729_v37, %v2328_v36  ;;  %s921_s16 = scalar_lea.sflag [#allocation18], %s2156_s23  ;;  %s1723_s13 = sshra.s32 %s992_s7, 4  ;;  %s1724_s13 = int_to_ptr.hbm [resolvable:$true] %s1723_s13 }
 0x1c3   : > { %v781_v3 = vsub.f32 1.5, %v780_v1  ;;  %s1725_s24 = scalar_lea.hbm %s1724_s13, 16  ;;  %s1729_s1 = scalar_lea.hbm %s2633_s9, 64 }
 0x1c4   : > { %p1726_p12 = scmp.ne.s32.totalorder %s1724_s13, %s1725_s24  ;;  %p1730_p7 = scmp.lt.s32.totalorder %s1724_s13, %s2633_s9 }
 0x1c5   : > { %p1731_p6 = scmp.lt.s32.totalorder %s1729_s1, %s1725_s24 }
 0x1c6   : > { %p1727_p13 = pnand %p1726_p12, %p2068_p3 }
 0x1c7   : > { %s971_s8 = scalar_lea.hbm %s2681_s19, %s2370_s18  ;;  %p1732_p5 = por %p1731_p6, %p1730_p7 }
 0x1c8   : > { %p1728_p1 = pneg %p1727_p13 }
 0x1ca   : > { %p1733_p2 = pnand %p1732_p5, %p1728_p1 }
 0x1cc   : > { %1736 = shalt.err (!%p1733_p2)
}
 0x1cd   : > { %1397 = dma.vmem_to_hbm [thread:$0]  (%p2068_p3), %s2482_s30, 256, %s992_s7, %s921_s16, %s1884_s11, %s1884_s11, %s1885_s12   ;;  %v1498_v36 = vpop.eup %1497  ;;  %v782_v4 = vmul.f32 %v2416_v53, %v781_v3  ;;  %vm2533_vm7 = vmor %vm783_vm5, %vm784_vm6 }
 0x1ce   : > { %s972_s20 = sshll.u32 %s2419_s0, 4  ;;  %733 = vst [vmem:[%s2373_s28 + $0x8] sm:$0xff] %v731_v2  ;;  %s2527_s13 = sshll.u32 %s971_s8, 4  ;;  %v1500_v5 = vpop.eup %1499  ;;  %v882_v7 = vmul.f32 %v1498_v36, %v2431_v57  ;;  %s973_s20 = int_to_ptr.vmem [resolvable:$true] %s972_s20  ;;  %s975_s13 = int_to_ptr.hbm [resolvable:$true] %s2527_s13 }
 0x1cf   : > { %s911_s24 = scalar_lea.sflag [#allocation15], %s2156_s23  ;;  %s1751_s30 = sshra.s32 %s958_s10, 4  ;;  %s1752_s30 = int_to_ptr.hbm [resolvable:$true] %s1751_s30 }
 0x1d0   : > { %s1753_s28 = scalar_lea.hbm %s1752_s30, 16  ;;  %s1757_s27 = scalar_lea.hbm %s2678_s26, 64 }
 0x1d1   : > { %p1754_p8 = scmp.ne.s32.totalorder %s1752_s30, %s1753_s28  ;;  %p1758_p9 = scmp.lt.s32.totalorder %s1752_s30, %s2678_s26 }
 0x1d2   : > { %p1759_p10 = scmp.lt.s32.totalorder %s1757_s27, %s1753_s28 }
 0x1d3   : > { %p1755_p0 = pnand %p1754_p8, %p2068_p3 }
 0x1d4   : > { %p1760_p12 = por %p1759_p10, %p1758_p9 }
 0x1d5   : > { %p1756_p11 = pneg %p1755_p0 }
 0x1d7   : > { %p1761_p13 = pnand %p1760_p12, %p1756_p11 }
 0x1d9   : > { %1764 = shalt.err (!%p1761_p13)
}
 0x1da   : > { %1395 = dma.vmem_to_hbm [thread:$0]  (%p2068_p3), %s2491_s21, 256, %s958_s10, %s911_s24, %s1884_s11, %s1884_s11, %s1885_s12   ;;  %v786_v8 = vsel %vm2533_vm7, %v2416_v53, %v782_v4  ;;  %v892_v9 = vmul.f32 %v1500_v5, %v2446_v60  ;;  %v883_v11 = vmul.f32 %v1498_v36, %v882_v7 }
 0x1db   : > { %v788_v10 = vmul.f32 %v786_v8, %v2336_v40  ;;  %s1779_s17 = sshra.s32 %s975_s13, 4  ;;  %s1785_s30 = scalar_lea.hbm %s2681_s19, 64  ;;  %s1780_s17 = int_to_ptr.hbm [resolvable:$true] %s1779_s17 }
 0x1dc   : > { %v893_v12 = vmul.f32 %v1500_v5, %v892_v9  ;;  %v884_v13 = vmul.f32 0.5, %v883_v11  ;;  %s1781_s25 = scalar_lea.hbm %s1780_s17, 16  ;;  %p1786_p5 = scmp.lt.s32.totalorder %s1780_s17, %s2681_s19 }
 0x1dd   : > { %790 = vst [vmem:[%s2419_s0 + $0x8] sm:$0xff] %v788_v10  ;;  %p1782_p1 = scmp.ne.s32.totalorder %s1780_s17, %s1781_s25  ;;  %p1787_p2 = scmp.lt.s32.totalorder %s1785_s30, %s1781_s25 }
 0x1de   : > { %v894_v14 = vmul.f32 0.5, %v893_v12 }
 0x1df   : > { %p1783_p7 = pnand %p1782_p1, %p2068_p3  ;;  %p1788_p8 = por %p1787_p2, %p1786_p5 }
 0x1e1   : > { %p1784_p6 = pneg %p1783_p7 }
 0x1e3   : > { %p1789_p0 = pnand %p1788_p8, %p1784_p6 }
 0x1e5   : > { %1792 = shalt.err (!%p1789_p0)
}
 0x1e6   : > { %1396 = dma.vmem_to_hbm [thread:$0]  (%p2068_p3), %s973_s20, 256, %s975_s13, %s911_s24, %s1884_s11, %s1884_s11, %s1885_s12   ;;  %v885_v40 = vsub.f32 1.5, %v884_v13  ;;  %vm888_vm8 = vweird.f32 %v1498_v36  ;;  %v895_v15 = vsub.f32 1.5, %v894_v14  ;;  %vm898_vm9 = vweird.f32 %v1500_v5 }
 0x1e7   : > { %s2684_s27 = sld [smem:[#allocation37_spill]]  ;;  %vm887_vm10 = vweird.f32 %v2431_v57  ;;  %s593_s1 = scalar_lea.vmem [#allocation19], %s2162_s29  ;;  %vm897_vm11 = vweird.f32 %v2446_v60 }
 0x1e8   : > { %v886_v16 = vmul.f32 %v1498_v36, %v885_v40  ;;  %s1006_s17 = sshll.u32 %s593_s1, 4  ;;  %v896_v17 = vmul.f32 %v1500_v5, %v895_v15  ;;  %vm889_vm12 = vmor %vm887_vm10, %vm888_vm8  ;;  %s1007_s17 = int_to_ptr.vmem [resolvable:$true] %s1006_s17 }
 0x1e9   : > { %vm899_vm13 = vmor %vm897_vm11, %vm898_vm9 }
 0x1ea   : > { %v890_v18 = vsel %vm889_vm12, %v1498_v36, %v886_v16  ;;  %v900_v19 = vsel %vm899_vm13, %v1500_v5, %v896_v17 }
 0x1eb   : > { %v901_v20 = vmul.f32 %v890_v18, %v2340_v42  ;;  %v902_v21 = vmul.f32 %v900_v19, %v2344_v44 }
 0x1ed   : > { %s1005_s3 = scalar_lea.hbm %s2684_s27, %s2370_s18  ;;  %903 = vst [vmem:[%s593_s1] sm:$0xff] %v901_v20  ;;  %s1813_s24 = scalar_lea.hbm %s2684_s27, 64 }
 0x1ee   : > { %s1008_s25 = sshll.u32 %s1005_s3, 4  ;;  %904 = vst [vmem:[%s593_s1 + $0x8] sm:$0xff] %v902_v21  ;;  %s1009_s25 = int_to_ptr.hbm [resolvable:$true] %s1008_s25 }
 0x1ef   : > { %s1807_s18 = sshra.s32 %s1009_s25, 4  ;;  %s1808_s18 = int_to_ptr.hbm [resolvable:$true] %s1807_s18 }
 0x1f0   : > { %s1809_s29 = scalar_lea.hbm %s1808_s18, 16  ;;  %p1814_p12 = scmp.lt.s32.totalorder %s1808_s18, %s2684_s27 }
 0x1f1   : > { %p1810_p11 = scmp.ne.s32.totalorder %s1808_s18, %s1809_s29  ;;  %p1815_p13 = scmp.lt.s32.totalorder %s1813_s24, %s1809_s29 }
 0x1f3   : > { %p1811_p9 = pnand %p1810_p11, %p2068_p3  ;;  %p1816_p1 = por %p1815_p13, %p1814_p12 }
 0x1f5   : > { %p1812_p10 = pneg %p1811_p9 }
 0x1f7   : > { %p1817_p7 = pnand %p1816_p1, %p1812_p10 }
 0x1f9   : > { %1820 = shalt.err (!%p1817_p7)
}
 0x1fa   : > { %1398 = dma.vmem_to_hbm [thread:$0]  (%p2068_p3), %s1007_s17, 256, %s1009_s25, %s921_s16, %s1884_s11, %s1884_s11, %s1885_s12  }
 0x1fb PF: > { %s2685_s30 = sld [smem:[#allocation28_spill]] }
 0x1fc   : > { %s2686_s28 = sld [smem:[#allocation27_spill]] }
 0x201   : > { %p1443_p6 = scmp.ge.s32.totalorder %s2685_s30, 2 }
 0x202   : > { %s1023_s0 = sand.u32 1, %s2686_s28  }
 0x203   : > { %p1425_p5 = pnand %p1443_p6, %p2072_p4  ;;  %s1024_s8 = scalar_lea.sflag [#allocation4], %s1023_s0 }
 0x205   : > { %p1426_p2 = pneg %p1425_p5 }
 0x207   : > { %1854 = dma.done.wait (%p1426_p2), %s1024_s8, 256  }
 0x208   : > { %1856 = vsyncadd (%p1426_p2), %s1024_s8, 4294967040  ;;  %s2688_s22 = sadd.s32 4294967294, %s2685_s30  }
 0x209   : > { %s1033_s3 = sand.u32 1, %s2688_s22  }
 0x20a   : > { %s1034_s1 = scalar_lea.sflag [#allocation15], %s1033_s3 }
 0x20b   : > { %1858 = dma.done.wait (%p1426_p2), %s1034_s1, 512  }
 0x20c   : > { %1860 = vsyncadd (%p1426_p2), %s1034_s1, 4294966784  ;;  %s1054_s23 = scalar_lea.sflag [#allocation18], %s1033_s3 }
 0x20d   : > { %1862 = dma.done.wait (%p1426_p2), %s1054_s23, 512  }
 0x20e   : > { %1864 = vsyncadd (%p1426_p2), %s1054_s23, 4294966784  ;;  %s2689_s16 = sld [smem:[#allocation29_spill]]  ;;  %s2691_s13 = smov %s1871_s14 }
 0x20f   : > { %s2690_s11 = sld [smem:[#allocation30_spill]]  ;;  %s2692_s14 = smov %s1875_s15 }
 0x214   : > { %p37_p3 = scmp.ge.s32.totalorder %s2689_s16, 6  }
 0x215   : > { %s2693_s15 = smov %s2690_s11 }
 0x216   :  { %39 = sbr.rel (!%p37_p3) target bundleno = 21 (0x15), region = 206 }
 0x21b   :  { %1070 = vsyncpa [#allocation3], 1 }
 0x21c   :  { %1072 = vsyncpa [#allocation3 + $0x1], 1 }
 0x21d   :  { %1073 = vsyncpa [#allocation6], 1 }
 0x21e   :  { %1075 = vsyncpa [#allocation6 + $0x1], 1 }
 0x21f   :  { %1076 = vsyncpa [#allocation9], 1 }
 0x220   :  { %1078 = vsyncpa [#allocation9 + $0x1], 1 }
 0x221   :  { %1079 = vsyncpa [#allocation12], 1 }
 0x222   :  { %1081 = vsyncpa [#allocation12 + $0x1], 1 }
 0x223   :  { %1082 = vsyncpa [#allocation4], 1 }
 0x224   :  { %1084 = vsyncpa [#allocation4 + $0x1], 1 }
 0x225   :  { %1085 = vsyncpa [#allocation15], 1 }
 0x226   :  { %1087 = vsyncpa [#allocation15 + $0x1], 1 }
 0x227   :  { %1088 = vsyncpa [#allocation18], 1 }
 0x228   :  { %1090 = vsyncpa [#allocation18 + $0x1], 1 }

</bundles_post_ra>
